<compile_context>
chip_gen: v7x
topology: tpu7x:2x2x1
jax: 0.10.0
libtpu: 0.0.40
codegen_flags: <defaults>
</compile_context>

<pallas_src>
import functools

import jax
import jax.numpy as jnp
from jax import lax
from jax.experimental import pallas as pl
from jax.experimental.pallas import tpu as pltpu

EPS = 1e-5      # PyTorch InstanceNorm2d default eps
LANE = 128      # channel padding granularity (TPU lane width)


def _ceil_to(x, m):
    return (x + m - 1) // m * m


@functools.lru_cache(maxsize=1)
def _vmem_limit_bytes():
    """Raise the scoped-VMEM limit safely for the detected chip."""
    try:
        cap = int(pltpu.get_tpu_info().vmem_capacity_bytes)
    except Exception:
        cap = 64 << 20            # conservative (v7x physical VMEM)
    return int(min(cap * 3 // 4, 100 << 20))


def _pick_row_tile(h, w, c_out_p, budget_bytes=2 << 20):
    """Largest divisor of H whose (2*th, 2*w, c_out_p) f32 output tile fits budget."""
    divs = [d for d in range(1, h + 1) if h % d == 0]
    fitting = [d for d in divs if d * 2 * w * 2 * c_out_p * 4 <= budget_bytes]
    return max(fitting) if fitting else divs[0]


# --------------------------------------------------------------------------- #
# Pass 1: transposed conv via 4-phase sub-pixel decomposition + partial stats.
#   xp_ref : (1, H+2, W+2, Cin_p)  bf16, channels-last, zero-padded by 1
#   w_ref  : (16, Cin_p, C_p)      bf16, one (Cin_p, C_p) tap per (py,px,dy,dx)
#   y_ref  : (1, TH, 2, W, 2*C_p)  f32  conv output (phase-interleaved layout)
#   ps_ref : (1, 1, 2, C_p)        f32  per-tile [sum, sum of squares]
# --------------------------------------------------------------------------- #
def _make_conv_kernel(th, w, cin_p, c_p):
    def conv_kernel(xp_ref, w_ref, y_ref, ps_ref):
        t = pl.program_id(1)
        r0 = t * th
        # Three halo'd row blocks (padded rows r0 .. r0+th+1), channels-last.
        xrows = [xp_ref[0, pl.ds(r0 + off, th), :, :] for off in range(3)]

        s1 = jnp.zeros((1, c_p), jnp.float32)
        s2 = jnp.zeros((1, c_p), jnp.float32)
        for py in range(2):
            for px in range(2):
                acc = jnp.zeros((th * w, c_p), jnp.float32)
                for dy in range(2):
                    for dx in range(2):
                        idx = ((py * 2 + px) * 2 + dy) * 2 + dx
                        xs = xrows[py + dy][:, px + dx:px + dx + w, :]
                        xs = xs.reshape(th * w, cin_p)
                        acc = acc + jnp.dot(
                            xs, w_ref[idx],
                            preferred_element_type=jnp.float32)
                s1 = s1 + jnp.sum(acc, axis=0, keepdims=True)
                s2 = s2 + jnp.sum(acc * acc, axis=0, keepdims=True)
                # Lane-aligned dense store of this phase (offset is a multiple
                # of 128); the (H,2,W,2*C_p) layout makes NHWC a free reshape.
                y_ref[0, :, py, :, px * c_p:(px + 1) * c_p] = (
                    acc.reshape(th, w, c_p))
        ps_ref[0, 0] = jnp.concatenate([s1, s2], axis=0)

    return conv_kernel


# --------------------------------------------------------------------------- #
# Pass 2: fused instance-norm affine (single FMA) + ReLU, tiled over rows.
# --------------------------------------------------------------------------- #
def _norm_relu_kernel(y_ref, s_ref, b_ref, o_ref):
    o_ref[0] = jnp.maximum(y_ref[0] * s_ref[0] + b_ref[0], 0.0)


@functools.partial(jax.jit, static_argnames=("row_tile", "channels_last_output"))
def upblock_forward(x, w_t, gamma, beta, row_tile=None,
                    channels_last_output=False):
    """UpBlock forward.

    x     : (N, Cin, H, W)  float32 (NCHW, PyTorch convention)
    w_t   : (Cin, Cout, 4, 4) ConvTranspose2d weight
    gamma, beta : (Cout,) InstanceNorm2d affine parameters
    Returns (N, Cout, 2H, 2W) float32, or (N, 2H, 2W, Cout) if
    channels_last_output=True (skips the final NCHW transpose).
    """
    n, cin, h, w = x.shape
    cout = w_t.shape[1]
    ho, wo = 2 * h, 2 * w
    cin_p = _ceil_to(cin, LANE)
    c_p = _ceil_to(cout, LANE)

    th = row_tile if row_tile is not None else _pick_row_tile(h, w, c_p)
    if h % th != 0:
        raise ValueError(f"row_tile={th} must divide H={h}")
    n_t = h // th
    r2 = 2 * th
    vmem_limit = _vmem_limit_bytes()

    # ---- host-side prep (small relative to the output tensor) --------------
    # channels-last, zero-padded by 1 spatially and to a lane multiple, bf16.
    xp = jnp.transpose(x, (0, 2, 3, 1))
    xp = jnp.pad(xp, ((0, 0), (1, 1), (1, 1), (0, cin_p - cin)))
    xp = xp.astype(jnp.bfloat16)

    # 16 weight taps: tap[((py*2+px)*2+dy)*2+dx] = w_t[:, :, 3-py-2dy, 3-px-2dx]
    taps = []
    for py in range(2):
        for px in range(2):
            for dy in range(2):
                for dx in range(2):
                    taps.append(w_t[:, :, 3 - py - 2 * dy, 3 - px - 2 * dx])
    w_taps = jnp.stack(taps, axis=0)                               # (16, Cin, Cout)
    w_taps = jnp.pad(w_taps, ((0, 0), (0, cin_p - cin), (0, c_p - cout)))
    w_taps = w_taps.astype(jnp.bfloat16)

    gamma_p = jnp.pad(gamma.astype(jnp.float32), (0, c_p - cout))
    beta_p = jnp.pad(beta.astype(jnp.float32), (0, c_p - cout))

    # ---- pass 1: conv (phase decomposition) + per-tile partial stats -------
    conv_kernel = _make_conv_kernel(th, w, cin_p, c_p)
    y, part = pl.pallas_call(
        conv_kernel,
        out_shape=(
            jax.ShapeDtypeStruct((n, h, 2, w, 2 * c_p), jnp.float32),
            jax.ShapeDtypeStruct((n, n_t, 2, c_p), jnp.float32),
        ),
        grid_spec=pl.GridSpec(
            grid=(n, n_t),
            in_specs=[
                # Raw input block, resident across the row-tile axis (constant
                # index in t -> fetched from HBM once per batch element).
                pl.BlockSpec((1, h + 2, w + 2, cin_p),
                             lambda b, t: (b, 0, 0, 0)),
                # Weights stay VMEM-resident across the whole grid.
                pl.BlockSpec((16, cin_p, c_p), lambda b, t: (0, 0, 0)),
            ],
            out_specs=(
                pl.BlockSpec((1, th, 2, w, 2 * c_p),
                             lambda b, t: (b, t, 0, 0, 0)),
                pl.BlockSpec((1, 1, 2, c_p), lambda b, t: (b, t, 0, 0)),
            ),
        ),
        compiler_params=pltpu.CompilerParams(
            dimension_semantics=("parallel", "parallel"),
            vmem_limit_bytes=vmem_limit),
    )(xp, w_taps)

    # ---- instance-norm statistics -> folded scale/bias (tiny) --------------
    sums = jnp.sum(part, axis=1)                                   # (N, 2, C_p)
    inv_hw = 1.0 / float(ho * wo)
    mean = sums[:, 0] * inv_hw
    var = jnp.maximum(sums[:, 1] * inv_hw - mean * mean, 0.0)
    inv_std = lax.rsqrt(var + EPS)
    scale = gamma_p[None, :] * inv_std                             # (N, C_p)
    bias = beta_p[None, :] - mean * scale
    scale3 = scale[:, None, :]                                     # (N, 1, C_p)
    bias3 = bias[:, None, :]

    # (N, H, 2, W, 2*C_p) is element-order identical to NHWC -> free reshape.
    y_nhwc = y.reshape(n, ho, wo, c_p)

    # ---- pass 2: fused (y*scale + bias) + ReLU, tiled over rows -------------
    out_p = pl.pallas_call(
        _norm_relu_kernel,
        out_shape=jax.ShapeDtypeStruct((n, ho, wo, c_p), jnp.float32),
        grid_spec=pl.GridSpec(
            grid=(n, ho // r2),
            in_specs=[
                pl.BlockSpec((1, r2, wo, c_p), lambda b, t: (b, t, 0, 0)),
                pl.BlockSpec((1, 1, c_p), lambda b, t: (b, 0, 0)),
                pl.BlockSpec((1, 1, c_p), lambda b, t: (b, 0, 0)),
            ],
            out_specs=pl.BlockSpec((1, r2, wo, c_p),
                                   lambda b, t: (b, t, 0, 0)),
        ),
        compiler_params=pltpu.CompilerParams(
            dimension_semantics=("parallel", "parallel"),
            vmem_limit_bytes=vmem_limit),
    )(y_nhwc, scale3, bias3)

    out_nhwc = out_p[..., :cout]
    if channels_last_output:
        return out_nhwc
    return jnp.transpose(out_nhwc, (0, 3, 1, 2))


# --------------------------------------------------------------------------- #
# Pure-JAX reference (no Pallas).  The conv uses bf16 inputs with f32
# accumulation to mirror the kernel's MXU precision; everything else is f32.
# --------------------------------------------------------------------------- #
def upblock_reference(x, w_t, gamma, beta):
    cout = w_t.shape[1]
    # Regular-conv weight: W_conv[co, ci, ky, kx] = w_t[ci, co, 3-ky, 3-kx]
    w_conv = jnp.flip(w_t, axis=(2, 3)).transpose(1, 0, 2, 3)      # (Cout,Cin,4,4)
    y = lax.conv_general_dilated(
        x.astype(jnp.bfloat16), w_conv.astype(jnp.bfloat16),
        window_strides=(1, 1), padding=((2, 2), (2, 2)),
        lhs_dilation=(2, 2), rhs_dilation=(1, 1),
        dimension_numbers=("NCHW", "OIHW", "NCHW"),
        preferred_element_type=jnp.float32)
    mean = jnp.mean(y, axis=(2, 3), keepdims=True)
    var = jnp.mean(jnp.square(y - mean), axis=(2, 3), keepdims=True)
    yn = (y - mean) * lax.rsqrt(var + EPS)
    yn = yn * gamma.reshape(1, cout, 1, 1) + beta.reshape(1, cout, 1, 1)
    return jnp.maximum(yn, 0.0)


if __name__ == "__main__":
    key = jax.random.PRNGKey(0)
    k_x, k_w, k_g, k_b = jax.random.split(key, 4)

    N, C_IN, C_OUT, H, W = 2, 4, 8, 16, 16

    x = jax.random.normal(k_x, (N, C_IN, H, W), dtype=jnp.float32)
    # ConvTranspose2d weight shape: (in_channels, out_channels, 4, 4)
    w_t = jax.random.normal(k_w, (C_IN, C_OUT, 4, 4), dtype=jnp.float32) * 0.1
    # InstanceNorm2d affine params (deterministic, non-trivial)
    gamma = 1.0 + 0.1 * jax.random.normal(k_g, (C_OUT,), dtype=jnp.float32)
    beta = 0.1 * jax.random.normal(k_b, (C_OUT,), dtype=jnp.float32)

    ref = jax.block_until_ready(upblock_reference(x, w_t, gamma, beta))

    # Multi-tile path (4 row tiles of the 16-row input -> exercises the
    # two-pass / partial-stats logic).
    out = jax.block_until_ready(upblock_forward(x, w_t, gamma, beta, row_tile=4))
    assert out.shape == (N, C_OUT, 2 * H, 2 * W), out.shape
    assert jnp.allclose(out, ref, atol=1e-3, rtol=1e-3), (
        float(jnp.max(jnp.abs(out - ref))))

    # Auto-tiled (single-tile) path must agree as well.
    out_auto = jax.block_until_ready(upblock_forward(x, w_t, gamma, beta))
    assert jnp.allclose(out_auto, ref, atol=1e-3, rtol=1e-3), (
        float(jnp.max(jnp.abs(out_auto - ref))))

    print("KERNEL_OK")
</pallas_src>

<mosaic_0001>
module attributes {stable_mosaic.version = 11 : i64} {
  func.func @conv_kernel(%arg0: i32, %arg1: i32, %arg2: memref<1x18x18x128xbf16, #tpu.memory_space<vmem>>, %arg3: memref<16x128x128xbf16, #tpu.memory_space<vmem>>, %arg4: memref<1x4x2x16x256xf32, #tpu.memory_space<vmem>>, %arg5: memref<1x1x2x128xf32, #tpu.memory_space<vmem>>) attributes {dimension_semantics = [#tpu.dimension_semantics<parallel>, #tpu.dimension_semantics<parallel>], iteration_bounds = array<i64: 2, 4>, scalar_prefetch = 0 : i64, scratch_operands = 0 : i64, tpu.core_type = #tpu.core_type<tc>, window_params = [{transform_indices = @transform_0, window_bounds = array<i64: 1, 18, 18, 128>}, {pipeline_mode = #tpu.pipeline_mode<synchronous>, transform_indices = @transform_1, window_bounds = array<i64: 16, 128, 128>}, {transform_indices = @transform_2, window_bounds = array<i64: 1, 4, 2, 16, 256>}, {transform_indices = @transform_3, window_bounds = array<i64: 1, 1, 2, 128>}]} {
    %c4_i32 = arith.constant 4 : i32
    %0 = arith.muli %arg1, %c4_i32 : i32
    %c0_i32 = arith.constant 0 : i32
    %1 = arith.addi %0, %c0_i32 : i32
    %c0 = arith.constant 0 : index
    %2 = arith.index_cast %1 : i32 to index
    %c0_0 = arith.constant 0 : index
    %c0_1 = arith.constant 0 : index
    %3 = vector.load %arg2[%c0, %2, %c0_0, %c0_1] : memref<1x18x18x128xbf16, #tpu.memory_space<vmem>>, vector<1x4x18x128xbf16>
    %4 = vector.shape_cast %3 : vector<1x4x18x128xbf16> to vector<4x18x128xbf16>
    %c1_i32 = arith.constant 1 : i32
    %5 = arith.addi %0, %c1_i32 : i32
    %c0_2 = arith.constant 0 : index
    %6 = arith.index_cast %5 : i32 to index
    %c0_3 = arith.constant 0 : index
    %c0_4 = arith.constant 0 : index
    %7 = vector.load %arg2[%c0_2, %6, %c0_3, %c0_4] : memref<1x18x18x128xbf16, #tpu.memory_space<vmem>>, vector<1x4x18x128xbf16>
    %8 = vector.shape_cast %7 : vector<1x4x18x128xbf16> to vector<4x18x128xbf16>
    %c2_i32 = arith.constant 2 : i32
    %9 = arith.addi %0, %c2_i32 : i32
    %c0_5 = arith.constant 0 : index
    %10 = arith.index_cast %9 : i32 to index
    %c0_6 = arith.constant 0 : index
    %c0_7 = arith.constant 0 : index
    %11 = vector.load %arg2[%c0_5, %10, %c0_6, %c0_7] : memref<1x18x18x128xbf16, #tpu.memory_space<vmem>>, vector<1x4x18x128xbf16>
    %12 = vector.shape_cast %11 : vector<1x4x18x128xbf16> to vector<4x18x128xbf16>
    %cst = arith.constant 0.000000e+00 : f32
    %13 = vector.broadcast %cst : f32 to vector<1x128xf32>
    %cst_8 = arith.constant 0.000000e+00 : f32
    %14 = vector.broadcast %cst_8 : f32 to vector<1x128xf32>
    %cst_9 = arith.constant 0.000000e+00 : f32
    %15 = vector.broadcast %cst_9 : f32 to vector<64x128xf32>
    %16 = vector.extract_strided_slice %4 {offsets = [0, 0, 0], sizes = [4, 16, 128], strides = [1, 1, 1]} : vector<4x18x128xbf16> to vector<4x16x128xbf16>
    %17 = vector.shape_cast %16 : vector<4x16x128xbf16> to vector<64x128xbf16>
    %c0_10 = arith.constant 0 : index
    %c0_11 = arith.constant 0 : index
    %c0_12 = arith.constant 0 : index
    %18 = vector.load %arg3[%c0_10, %c0_11, %c0_12] : memref<16x128x128xbf16, #tpu.memory_space<vmem>>, vector<1x128x128xbf16>
    %19 = vector.shape_cast %18 : vector<1x128x128xbf16> to vector<128x128xbf16>
    %cst_13 = arith.constant dense<0.000000e+00> : vector<64x128xf32>
    %20 = tpu.matmul %17, %19, %cst_13 {dimension_numbers = #tpu.dot_dimension_numbers<[1], [0], [0], [1], [0, 0, 1, 1], [], []>} : vector<64x128xbf16>, vector<128x128xbf16>, vector<64x128xf32> -> vector<64x128xf32>
    %21 = arith.addf %15, %20 : vector<64x128xf32>
    %22 = vector.extract_strided_slice %4 {offsets = [0, 1, 0], sizes = [4, 16, 128], strides = [1, 1, 1]} : vector<4x18x128xbf16> to vector<4x16x128xbf16>
    %23 = vector.shape_cast %22 : vector<4x16x128xbf16> to vector<64x128xbf16>
    %c1 = arith.constant 1 : index
    %c0_14 = arith.constant 0 : index
    %c0_15 = arith.constant 0 : index
    %24 = vector.load %arg3[%c1, %c0_14, %c0_15] : memref<16x128x128xbf16, #tpu.memory_space<vmem>>, vector<1x128x128xbf16>
    %25 = vector.shape_cast %24 : vector<1x128x128xbf16> to vector<128x128xbf16>
    %cst_16 = arith.constant dense<0.000000e+00> : vector<64x128xf32>
    %26 = tpu.matmul %23, %25, %cst_16 {dimension_numbers = #tpu.dot_dimension_numbers<[1], [0], [0], [1], [0, 0, 1, 1], [], []>} : vector<64x128xbf16>, vector<128x128xbf16>, vector<64x128xf32> -> vector<64x128xf32>
    %27 = arith.addf %21, %26 : vector<64x128xf32>
    %28 = vector.extract_strided_slice %8 {offsets = [0, 0, 0], sizes = [4, 16, 128], strides = [1, 1, 1]} : vector<4x18x128xbf16> to vector<4x16x128xbf16>
    %29 = vector.shape_cast %28 : vector<4x16x128xbf16> to vector<64x128xbf16>
    %c2 = arith.constant 2 : index
    %c0_17 = arith.constant 0 : index
    %c0_18 = arith.constant 0 : index
    %30 = vector.load %arg3[%c2, %c0_17, %c0_18] : memref<16x128x128xbf16, #tpu.memory_space<vmem>>, vector<1x128x128xbf16>
    %31 = vector.shape_cast %30 : vector<1x128x128xbf16> to vector<128x128xbf16>
    %cst_19 = arith.constant dense<0.000000e+00> : vector<64x128xf32>
    %32 = tpu.matmul %29, %31, %cst_19 {dimension_numbers = #tpu.dot_dimension_numbers<[1], [0], [0], [1], [0, 0, 1, 1], [], []>} : vector<64x128xbf16>, vector<128x128xbf16>, vector<64x128xf32> -> vector<64x128xf32>
    %33 = arith.addf %27, %32 : vector<64x128xf32>
    %34 = vector.extract_strided_slice %8 {offsets = [0, 1, 0], sizes = [4, 16, 128], strides = [1, 1, 1]} : vector<4x18x128xbf16> to vector<4x16x128xbf16>
    %35 = vector.shape_cast %34 : vector<4x16x128xbf16> to vector<64x128xbf16>
    %c3 = arith.constant 3 : index
    %c0_20 = arith.constant 0 : index
    %c0_21 = arith.constant 0 : index
    %36 = vector.load %arg3[%c3, %c0_20, %c0_21] : memref<16x128x128xbf16, #tpu.memory_space<vmem>>, vector<1x128x128xbf16>
    %37 = vector.shape_cast %36 : vector<1x128x128xbf16> to vector<128x128xbf16>
    %cst_22 = arith.constant dense<0.000000e+00> : vector<64x128xf32>
    %38 = tpu.matmul %35, %37, %cst_22 {dimension_numbers = #tpu.dot_dimension_numbers<[1], [0], [0], [1], [0, 0, 1, 1], [], []>} : vector<64x128xbf16>, vector<128x128xbf16>, vector<64x128xf32> -> vector<64x128xf32>
    %39 = arith.addf %33, %38 : vector<64x128xf32>
    %cst_23 = arith.constant dense<0.000000e+00> : vector<128xf32>
    %40 = vector.multi_reduction <add>, %39, %cst_23 [0] : vector<64x128xf32> to vector<128xf32>
    %41 = vector.shape_cast %40 : vector<128xf32> to vector<1x128xf32>
    %42 = arith.addf %13, %41 : vector<1x128xf32>
    %43 = arith.mulf %39, %39 : vector<64x128xf32>
    %cst_24 = arith.constant dense<0.000000e+00> : vector<128xf32>
    %44 = vector.multi_reduction <add>, %43, %cst_24 [0] : vector<64x128xf32> to vector<128xf32>
    %45 = vector.shape_cast %44 : vector<128xf32> to vector<1x128xf32>
    %46 = arith.addf %14, %45 : vector<1x128xf32>
    %47 = vector.shape_cast %39 : vector<64x128xf32> to vector<4x16x128xf32>
    %c0_25 = arith.constant 0 : index
    %c0_26 = arith.constant 0 : index
    %c0_27 = arith.constant 0 : index
    %c0_28 = arith.constant 0 : index
    %c0_29 = arith.constant 0 : index
    %48 = vector.load %arg4[%c0_25, %c0_26, %c0_27, %c0_28, %c0_29] : memref<1x4x2x16x256xf32, #tpu.memory_space<vmem>>, vector<1x4x1x16x128xf32>
    %49 = vector.shape_cast %48 : vector<1x4x1x16x128xf32> to vector<4x16x128xf32>
    %50 = vector.shape_cast %47 : vector<4x16x128xf32> to vector<1x4x1x16x128xf32>
    tpu.vector_store %arg4[%c0_25, %c0_26, %c0_27, %c0_28, %c0_29], %50 {strides = array<i32>} : memref<1x4x2x16x256xf32, #tpu.memory_space<vmem>>, vector<1x4x1x16x128xf32>,
    %cst_30 = arith.constant 0.000000e+00 : f32
    %51 = vector.broadcast %cst_30 : f32 to vector<64x128xf32>
    %52 = vector.extract_strided_slice %4 {offsets = [0, 1, 0], sizes = [4, 16, 128], strides = [1, 1, 1]} : vector<4x18x128xbf16> to vector<4x16x128xbf16>
    %53 = vector.shape_cast %52 : vector<4x16x128xbf16> to vector<64x128xbf16>
    %c4 = arith.constant 4 : index
    %c0_31 = arith.constant 0 : index
    %c0_32 = arith.constant 0 : index
    %54 = vector.load %arg3[%c4, %c0_31, %c0_32] : memref<16x128x128xbf16, #tpu.memory_space<vmem>>, vector<1x128x128xbf16>
    %55 = vector.shape_cast %54 : vector<1x128x128xbf16> to vector<128x128xbf16>
    %cst_33 = arith.constant dense<0.000000e+00> : vector<64x128xf32>
    %56 = tpu.matmul %53, %55, %cst_33 {dimension_numbers = #tpu.dot_dimension_numbers<[1], [0], [0], [1], [0, 0, 1, 1], [], []>} : vector<64x128xbf16>, vector<128x128xbf16>, vector<64x128xf32> -> vector<64x128xf32>
    %57 = arith.addf %51, %56 : vector<64x128xf32>
    %58 = vector.extract_strided_slice %4 {offsets = [0, 2, 0], sizes = [4, 16, 128], strides = [1, 1, 1]} : vector<4x18x128xbf16> to vector<4x16x128xbf16>
    %59 = vector.shape_cast %58 : vector<4x16x128xbf16> to vector<64x128xbf16>
    %c5 = arith.constant 5 : index
    %c0_34 = arith.constant 0 : index
    %c0_35 = arith.constant 0 : index
    %60 = vector.load %arg3[%c5, %c0_34, %c0_35] : memref<16x128x128xbf16, #tpu.memory_space<vmem>>, vector<1x128x128xbf16>
    %61 = vector.shape_cast %60 : vector<1x128x128xbf16> to vector<128x128xbf16>
    %cst_36 = arith.constant dense<0.000000e+00> : vector<64x128xf32>
    %62 = tpu.matmul %59, %61, %cst_36 {dimension_numbers = #tpu.dot_dimension_numbers<[1], [0], [0], [1], [0, 0, 1, 1], [], []>} : vector<64x128xbf16>, vector<128x128xbf16>, vector<64x128xf32> -> vector<64x128xf32>
    %63 = arith.addf %57, %62 : vector<64x128xf32>
    %64 = vector.extract_strided_slice %8 {offsets = [0, 1, 0], sizes = [4, 16, 128], strides = [1, 1, 1]} : vector<4x18x128xbf16> to vector<4x16x128xbf16>
    %65 = vector.shape_cast %64 : vector<4x16x128xbf16> to vector<64x128xbf16>
    %c6 = arith.constant 6 : index
    %c0_37 = arith.constant 0 : index
    %c0_38 = arith.constant 0 : index
    %66 = vector.load %arg3[%c6, %c0_37, %c0_38] : memref<16x128x128xbf16, #tpu.memory_space<vmem>>, vector<1x128x128xbf16>
    %67 = vector.shape_cast %66 : vector<1x128x128xbf16> to vector<128x128xbf16>
    %cst_39 = arith.constant dense<0.000000e+00> : vector<64x128xf32>
    %68 = tpu.matmul %65, %67, %cst_39 {dimension_numbers = #tpu.dot_dimension_numbers<[1], [0], [0], [1], [0, 0, 1, 1], [], []>} : vector<64x128xbf16>, vector<128x128xbf16>, vector<64x128xf32> -> vector<64x128xf32>
    %69 = arith.addf %63, %68 : vector<64x128xf32>
    %70 = vector.extract_strided_slice %8 {offsets = [0, 2, 0], sizes = [4, 16, 128], strides = [1, 1, 1]} : vector<4x18x128xbf16> to vector<4x16x128xbf16>
    %71 = vector.shape_cast %70 : vector<4x16x128xbf16> to vector<64x128xbf16>
    %c7 = arith.constant 7 : index
    %c0_40 = arith.constant 0 : index
    %c0_41 = arith.constant 0 : index
    %72 = vector.load %arg3[%c7, %c0_40, %c0_41] : memref<16x128x128xbf16, #tpu.memory_space<vmem>>, vector<1x128x128xbf16>
    %73 = vector.shape_cast %72 : vector<1x128x128xbf16> to vector<128x128xbf16>
    %cst_42 = arith.constant dense<0.000000e+00> : vector<64x128xf32>
    %74 = tpu.matmul %71, %73, %cst_42 {dimension_numbers = #tpu.dot_dimension_numbers<[1], [0], [0], [1], [0, 0, 1, 1], [], []>} : vector<64x128xbf16>, vector<128x128xbf16>, vector<64x128xf32> -> vector<64x128xf32>
    %75 = arith.addf %69, %74 : vector<64x128xf32>
    %cst_43 = arith.constant dense<0.000000e+00> : vector<128xf32>
    %76 = vector.multi_reduction <add>, %75, %cst_43 [0] : vector<64x128xf32> to vector<128xf32>
    %77 = vector.shape_cast %76 : vector<128xf32> to vector<1x128xf32>
    %78 = arith.addf %42, %77 : vector<1x128xf32>
    %79 = arith.mulf %75, %75 : vector<64x128xf32>
    %cst_44 = arith.constant dense<0.000000e+00> : vector<128xf32>
    %80 = vector.multi_reduction <add>, %79, %cst_44 [0] : vector<64x128xf32> to vector<128xf32>
    %81 = vector.shape_cast %80 : vector<128xf32> to vector<1x128xf32>
    %82 = arith.addf %46, %81 : vector<1x128xf32>
    %83 = vector.shape_cast %75 : vector<64x128xf32> to vector<4x16x128xf32>
    %c0_45 = arith.constant 0 : index
    %c0_46 = arith.constant 0 : index
    %c0_47 = arith.constant 0 : index
    %c0_48 = arith.constant 0 : index
    %c128 = arith.constant 128 : index
    %84 = vector.load %arg4[%c0_45, %c0_46, %c0_47, %c0_48, %c128] : memref<1x4x2x16x256xf32, #tpu.memory_space<vmem>>, vector<1x4x1x16x128xf32>
    %85 = vector.shape_cast %84 : vector<1x4x1x16x128xf32> to vector<4x16x128xf32>
    %86 = vector.shape_cast %83 : vector<4x16x128xf32> to vector<1x4x1x16x128xf32>
    tpu.vector_store %arg4[%c0_45, %c0_46, %c0_47, %c0_48, %c128], %86 {strides = array<i32>} : memref<1x4x2x16x256xf32, #tpu.memory_space<vmem>>, vector<1x4x1x16x128xf32>,
    %cst_49 = arith.constant 0.000000e+00 : f32
    %87 = vector.broadcast %cst_49 : f32 to vector<64x128xf32>
    %88 = vector.extract_strided_slice %8 {offsets = [0, 0, 0], sizes = [4, 16, 128], strides = [1, 1, 1]} : vector<4x18x128xbf16> to vector<4x16x128xbf16>
    %89 = vector.shape_cast %88 : vector<4x16x128xbf16> to vector<64x128xbf16>
    %c8 = arith.constant 8 : index
    %c0_50 = arith.constant 0 : index
    %c0_51 = arith.constant 0 : index
    %90 = vector.load %arg3[%c8, %c0_50, %c0_51] : memref<16x128x128xbf16, #tpu.memory_space<vmem>>, vector<1x128x128xbf16>
    %91 = vector.shape_cast %90 : vector<1x128x128xbf16> to vector<128x128xbf16>
    %cst_52 = arith.constant dense<0.000000e+00> : vector<64x128xf32>
    %92 = tpu.matmul %89, %91, %cst_52 {dimension_numbers = #tpu.dot_dimension_numbers<[1], [0], [0], [1], [0, 0, 1, 1], [], []>} : vector<64x128xbf16>, vector<128x128xbf16>, vector<64x128xf32> -> vector<64x128xf32>
    %93 = arith.addf %87, %92 : vector<64x128xf32>
    %94 = vector.extract_strided_slice %8 {offsets = [0, 1, 0], sizes = [4, 16, 128], strides = [1, 1, 1]} : vector<4x18x128xbf16> to vector<4x16x128xbf16>
    %95 = vector.shape_cast %94 : vector<4x16x128xbf16> to vector<64x128xbf16>
    %c9 = arith.constant 9 : index
    %c0_53 = arith.constant 0 : index
    %c0_54 = arith.constant 0 : index
    %96 = vector.load %arg3[%c9, %c0_53, %c0_54] : memref<16x128x128xbf16, #tpu.memory_space<vmem>>, vector<1x128x128xbf16>
    %97 = vector.shape_cast %96 : vector<1x128x128xbf16> to vector<128x128xbf16>
    %cst_55 = arith.constant dense<0.000000e+00> : vector<64x128xf32>
    %98 = tpu.matmul %95, %97, %cst_55 {dimension_numbers = #tpu.dot_dimension_numbers<[1], [0], [0], [1], [0, 0, 1, 1], [], []>} : vector<64x128xbf16>, vector<128x128xbf16>, vector<64x128xf32> -> vector<64x128xf32>
    %99 = arith.addf %93, %98 : vector<64x128xf32>
    %100 = vector.extract_strided_slice %12 {offsets = [0, 0, 0], sizes = [4, 16, 128], strides = [1, 1, 1]} : vector<4x18x128xbf16> to vector<4x16x128xbf16>
    %101 = vector.shape_cast %100 : vector<4x16x128xbf16> to vector<64x128xbf16>
    %c10 = arith.constant 10 : index
    %c0_56 = arith.constant 0 : index
    %c0_57 = arith.constant 0 : index
    %102 = vector.load %arg3[%c10, %c0_56, %c0_57] : memref<16x128x128xbf16, #tpu.memory_space<vmem>>, vector<1x128x128xbf16>
    %103 = vector.shape_cast %102 : vector<1x128x128xbf16> to vector<128x128xbf16>
    %cst_58 = arith.constant dense<0.000000e+00> : vector<64x128xf32>
    %104 = tpu.matmul %101, %103, %cst_58 {dimension_numbers = #tpu.dot_dimension_numbers<[1], [0], [0], [1], [0, 0, 1, 1], [], []>} : vector<64x128xbf16>, vector<128x128xbf16>, vector<64x128xf32> -> vector<64x128xf32>
    %105 = arith.addf %99, %104 : vector<64x128xf32>
    %106 = vector.extract_strided_slice %12 {offsets = [0, 1, 0], sizes = [4, 16, 128], strides = [1, 1, 1]} : vector<4x18x128xbf16> to vector<4x16x128xbf16>
    %107 = vector.shape_cast %106 : vector<4x16x128xbf16> to vector<64x128xbf16>
    %c11 = arith.constant 11 : index
    %c0_59 = arith.constant 0 : index
    %c0_60 = arith.constant 0 : index
    %108 = vector.load %arg3[%c11, %c0_59, %c0_60] : memref<16x128x128xbf16, #tpu.memory_space<vmem>>, vector<1x128x128xbf16>
    %109 = vector.shape_cast %108 : vector<1x128x128xbf16> to vector<128x128xbf16>
    %cst_61 = arith.constant dense<0.000000e+00> : vector<64x128xf32>
    %110 = tpu.matmul %107, %109, %cst_61 {dimension_numbers = #tpu.dot_dimension_numbers<[1], [0], [0], [1], [0, 0, 1, 1], [], []>} : vector<64x128xbf16>, vector<128x128xbf16>, vector<64x128xf32> -> vector<64x128xf32>
    %111 = arith.addf %105, %110 : vector<64x128xf32>
    %cst_62 = arith.constant dense<0.000000e+00> : vector<128xf32>
    %112 = vector.multi_reduction <add>, %111, %cst_62 [0] : vector<64x128xf32> to vector<128xf32>
    %113 = vector.shape_cast %112 : vector<128xf32> to vector<1x128xf32>
    %114 = arith.addf %78, %113 : vector<1x128xf32>
    %115 = arith.mulf %111, %111 : vector<64x128xf32>
    %cst_63 = arith.constant dense<0.000000e+00> : vector<128xf32>
    %116 = vector.multi_reduction <add>, %115, %cst_63 [0] : vector<64x128xf32> to vector<128xf32>
    %117 = vector.shape_cast %116 : vector<128xf32> to vector<1x128xf32>
    %118 = arith.addf %82, %117 : vector<1x128xf32>
    %119 = vector.shape_cast %111 : vector<64x128xf32> to vector<4x16x128xf32>
    %c0_64 = arith.constant 0 : index
    %c0_65 = arith.constant 0 : index
    %c1_66 = arith.constant 1 : index
    %c0_67 = arith.constant 0 : index
    %c0_68 = arith.constant 0 : index
    %120 = vector.load %arg4[%c0_64, %c0_65, %c1_66, %c0_67, %c0_68] : memref<1x4x2x16x256xf32, #tpu.memory_space<vmem>>, vector<1x4x1x16x128xf32>
    %121 = vector.shape_cast %120 : vector<1x4x1x16x128xf32> to vector<4x16x128xf32>
    %122 = vector.shape_cast %119 : vector<4x16x128xf32> to vector<1x4x1x16x128xf32>
    tpu.vector_store %arg4[%c0_64, %c0_65, %c1_66, %c0_67, %c0_68], %122 {strides = array<i32>} : memref<1x4x2x16x256xf32, #tpu.memory_space<vmem>>, vector<1x4x1x16x128xf32>,
    %cst_69 = arith.constant 0.000000e+00 : f32
    %123 = vector.broadcast %cst_69 : f32 to vector<64x128xf32>
    %124 = vector.extract_strided_slice %8 {offsets = [0, 1, 0], sizes = [4, 16, 128], strides = [1, 1, 1]} : vector<4x18x128xbf16> to vector<4x16x128xbf16>
    %125 = vector.shape_cast %124 : vector<4x16x128xbf16> to vector<64x128xbf16>
    %c12 = arith.constant 12 : index
    %c0_70 = arith.constant 0 : index
    %c0_71 = arith.constant 0 : index
    %126 = vector.load %arg3[%c12, %c0_70, %c0_71] : memref<16x128x128xbf16, #tpu.memory_space<vmem>>, vector<1x128x128xbf16>
    %127 = vector.shape_cast %126 : vector<1x128x128xbf16> to vector<128x128xbf16>
    %cst_72 = arith.constant dense<0.000000e+00> : vector<64x128xf32>
    %128 = tpu.matmul %125, %127, %cst_72 {dimension_numbers = #tpu.dot_dimension_numbers<[1], [0], [0], [1], [0, 0, 1, 1], [], []>} : vector<64x128xbf16>, vector<128x128xbf16>, vector<64x128xf32> -> vector<64x128xf32>
    %129 = arith.addf %123, %128 : vector<64x128xf32>
    %130 = vector.extract_strided_slice %8 {offsets = [0, 2, 0], sizes = [4, 16, 128], strides = [1, 1, 1]} : vector<4x18x128xbf16> to vector<4x16x128xbf16>
    %131 = vector.shape_cast %130 : vector<4x16x128xbf16> to vector<64x128xbf16>
    %c13 = arith.constant 13 : index
    %c0_73 = arith.constant 0 : index
    %c0_74 = arith.constant 0 : index
    %132 = vector.load %arg3[%c13, %c0_73, %c0_74] : memref<16x128x128xbf16, #tpu.memory_space<vmem>>, vector<1x128x128xbf16>
    %133 = vector.shape_cast %132 : vector<1x128x128xbf16> to vector<128x128xbf16>
    %cst_75 = arith.constant dense<0.000000e+00> : vector<64x128xf32>
    %134 = tpu.matmul %131, %133, %cst_75 {dimension_numbers = #tpu.dot_dimension_numbers<[1], [0], [0], [1], [0, 0, 1, 1], [], []>} : vector<64x128xbf16>, vector<128x128xbf16>, vector<64x128xf32> -> vector<64x128xf32>
    %135 = arith.addf %129, %134 : vector<64x128xf32>
    %136 = vector.extract_strided_slice %12 {offsets = [0, 1, 0], sizes = [4, 16, 128], strides = [1, 1, 1]} : vector<4x18x128xbf16> to vector<4x16x128xbf16>
    %137 = vector.shape_cast %136 : vector<4x16x128xbf16> to vector<64x128xbf16>
    %c14 = arith.constant 14 : index
    %c0_76 = arith.constant 0 : index
    %c0_77 = arith.constant 0 : index
    %138 = vector.load %arg3[%c14, %c0_76, %c0_77] : memref<16x128x128xbf16, #tpu.memory_space<vmem>>, vector<1x128x128xbf16>
    %139 = vector.shape_cast %138 : vector<1x128x128xbf16> to vector<128x128xbf16>
    %cst_78 = arith.constant dense<0.000000e+00> : vector<64x128xf32>
    %140 = tpu.matmul %137, %139, %cst_78 {dimension_numbers = #tpu.dot_dimension_numbers<[1], [0], [0], [1], [0, 0, 1, 1], [], []>} : vector<64x128xbf16>, vector<128x128xbf16>, vector<64x128xf32> -> vector<64x128xf32>
    %141 = arith.addf %135, %140 : vector<64x128xf32>
    %142 = vector.extract_strided_slice %12 {offsets = [0, 2, 0], sizes = [4, 16, 128], strides = [1, 1, 1]} : vector<4x18x128xbf16> to vector<4x16x128xbf16>
    %143 = vector.shape_cast %142 : vector<4x16x128xbf16> to vector<64x128xbf16>
    %c15 = arith.constant 15 : index
    %c0_79 = arith.constant 0 : index
    %c0_80 = arith.constant 0 : index
    %144 = vector.load %arg3[%c15, %c0_79, %c0_80] : memref<16x128x128xbf16, #tpu.memory_space<vmem>>, vector<1x128x128xbf16>
    %145 = vector.shape_cast %144 : vector<1x128x128xbf16> to vector<128x128xbf16>
    %cst_81 = arith.constant dense<0.000000e+00> : vector<64x128xf32>
    %146 = tpu.matmul %143, %145, %cst_81 {dimension_numbers = #tpu.dot_dimension_numbers<[1], [0], [0], [1], [0, 0, 1, 1], [], []>} : vector<64x128xbf16>, vector<128x128xbf16>, vector<64x128xf32> -> vector<64x128xf32>
    %147 = arith.addf %141, %146 : vector<64x128xf32>
    %cst_82 = arith.constant dense<0.000000e+00> : vector<128xf32>
    %148 = vector.multi_reduction <add>, %147, %cst_82 [0] : vector<64x128xf32> to vector<128xf32>
    %149 = vector.shape_cast %148 : vector<128xf32> to vector<1x128xf32>
    %150 = arith.addf %114, %149 : vector<1x128xf32>
    %151 = arith.mulf %147, %147 : vector<64x128xf32>
    %cst_83 = arith.constant dense<0.000000e+00> : vector<128xf32>
    %152 = vector.multi_reduction <add>, %151, %cst_83 [0] : vector<64x128xf32> to vector<128xf32>
    %153 = vector.shape_cast %152 : vector<128xf32> to vector<1x128xf32>
    %154 = arith.addf %118, %153 : vector<1x128xf32>
    %155 = vector.shape_cast %147 : vector<64x128xf32> to vector<4x16x128xf32>
    %c0_84 = arith.constant 0 : index
    %c0_85 = arith.constant 0 : index
    %c1_86 = arith.constant 1 : index
    %c0_87 = arith.constant 0 : index
    %c128_88 = arith.constant 128 : index
    %156 = vector.load %arg4[%c0_84, %c0_85, %c1_86, %c0_87, %c128_88] : memref<1x4x2x16x256xf32, #tpu.memory_space<vmem>>, vector<1x4x1x16x128xf32>
    %157 = vector.shape_cast %156 : vector<1x4x1x16x128xf32> to vector<4x16x128xf32>
    %158 = vector.shape_cast %155 : vector<4x16x128xf32> to vector<1x4x1x16x128xf32>
    tpu.vector_store %arg4[%c0_84, %c0_85, %c1_86, %c0_87, %c128_88], %158 {strides = array<i32>} : memref<1x4x2x16x256xf32, #tpu.memory_space<vmem>>, vector<1x4x1x16x128xf32>,
    %159 = tpu.concatenate %150, %154 in 0 : vector<1x128xf32>, vector<1x128xf32> -> vector<2x128xf32>
    %c0_89 = arith.constant 0 : index
    %c0_90 = arith.constant 0 : index
    %c0_91 = arith.constant 0 : index
    %c0_92 = arith.constant 0 : index
    %160 = vector.load %arg5[%c0_89, %c0_90, %c0_91, %c0_92] : memref<1x1x2x128xf32, #tpu.memory_space<vmem>>, vector<1x1x2x128xf32>
    %161 = vector.shape_cast %160 : vector<1x1x2x128xf32> to vector<2x128xf32>
    %162 = vector.shape_cast %159 : vector<2x128xf32> to vector<1x1x2x128xf32>
    tpu.vector_store %arg5[%c0_89, %c0_90, %c0_91, %c0_92], %162 {strides = array<i32>} : memref<1x1x2x128xf32, #tpu.memory_space<vmem>>, vector<1x1x2x128xf32>,
    return
  }
  func.func @transform_0(%arg0: i32, %arg1: i32) -> (i32, i32, i32, i32) {
    %c0_i32 = arith.constant 0 : i32
    %c0_i32_0 = arith.constant 0 : i32
    %c0_i32_1 = arith.constant 0 : i32
    %c0_i32_2 = arith.constant 0 : i32
    return %arg0, %c0_i32, %c0_i32_0, %c0_i32_1 : i32, i32, i32, i32
  }
  func.func @transform_1(%arg0: i32, %arg1: i32) -> (i32, i32, i32) {
    %c0_i32 = arith.constant 0 : i32
    %c0_i32_0 = arith.constant 0 : i32
    %c0_i32_1 = arith.constant 0 : i32
    %c0_i32_2 = arith.constant 0 : i32
    return %c0_i32, %c0_i32_0, %c0_i32_1 : i32, i32, i32
  }
  func.func @transform_2(%arg0: i32, %arg1: i32) -> (i32, i32, i32, i32, i32) {
    %c0_i32 = arith.constant 0 : i32
    %c0_i32_0 = arith.constant 0 : i32
    %c0_i32_1 = arith.constant 0 : i32
    %c0_i32_2 = arith.constant 0 : i32
    return %arg0, %arg1, %c0_i32, %c0_i32_0, %c0_i32_1 : i32, i32, i32, i32, i32
  }
  func.func @transform_3(%arg0: i32, %arg1: i32) -> (i32, i32, i32, i32) {
    %c0_i32 = arith.constant 0 : i32
    %c0_i32_0 = arith.constant 0 : i32
    %c0_i32_1 = arith.constant 0 : i32
    return %arg0, %arg1, %c0_i32, %c0_i32_0 : i32, i32, i32, i32
  }
}

module attributes {stable_mosaic.version = 11 : i64} {
  func.func @_norm_relu_kernel(%arg0: i32, %arg1: i32, %arg2: memref<1x8x32x128xf32, #tpu.memory_space<vmem>>, %arg3: memref<1x1x128xf32, #tpu.memory_space<vmem>>, %arg4: memref<1x1x128xf32, #tpu.memory_space<vmem>>, %arg5: memref<1x8x32x128xf32, #tpu.memory_space<vmem>>) attributes {dimension_semantics = [#tpu.dimension_semantics<parallel>, #tpu.dimension_semantics<parallel>], iteration_bounds = array<i64: 2, 4>, scalar_prefetch = 0 : i64, scratch_operands = 0 : i64, tpu.core_type = #tpu.core_type<tc>, window_params = [{transform_indices = @transform_0, window_bounds = array<i64: 1, 8, 32, 128>}, {transform_indices = @transform_1, window_bounds = array<i64: 1, 1, 128>}, {transform_indices = @transform_2, window_bounds = array<i64: 1, 1, 128>}, {transform_indices = @transform_3, window_bounds = array<i64: 1, 8, 32, 128>}]} {
    %c0 = arith.constant 0 : index
    %c0_0 = arith.constant 0 : index
    %c0_1 = arith.constant 0 : index
    %c0_2 = arith.constant 0 : index
    %0 = vector.load %arg2[%c0, %c0_0, %c0_1, %c0_2] : memref<1x8x32x128xf32, #tpu.memory_space<vmem>>, vector<1x8x32x128xf32>
    %1 = vector.shape_cast %0 : vector<1x8x32x128xf32> to vector<8x32x128xf32>
    %c0_3 = arith.constant 0 : index
    %c0_4 = arith.constant 0 : index
    %c0_5 = arith.constant 0 : index
    %2 = vector.load %arg3[%c0_3, %c0_4, %c0_5] : memref<1x1x128xf32, #tpu.memory_space<vmem>>, vector<1x1x128xf32>
    %3 = vector.shape_cast %2 : vector<1x1x128xf32> to vector<1x128xf32>
    %4 = vector.shape_cast %3 : vector<1x128xf32> to vector<1x1x128xf32>
    %5 = vector.broadcast %4 : vector<1x1x128xf32> to vector<8x32x128xf32>
    %6 = arith.mulf %1, %5 : vector<8x32x128xf32>
    %c0_6 = arith.constant 0 : index
    %c0_7 = arith.constant 0 : index
    %c0_8 = arith.constant 0 : index
    %7 = vector.load %arg4[%c0_6, %c0_7, %c0_8] : memref<1x1x128xf32, #tpu.memory_space<vmem>>, vector<1x1x128xf32>
    %8 = vector.shape_cast %7 : vector<1x1x128xf32> to vector<1x128xf32>
    %9 = vector.shape_cast %8 : vector<1x128xf32> to vector<1x1x128xf32>
    %10 = vector.broadcast %9 : vector<1x1x128xf32> to vector<8x32x128xf32>
    %11 = arith.addf %6, %10 : vector<8x32x128xf32>
    %cst = arith.constant 0.000000e+00 : f32
    %12 = vector.broadcast %cst : f32 to vector<8x32x128xf32>
    %13 = arith.maximumf %11, %12 : vector<8x32x128xf32>
    %c0_9 = arith.constant 0 : index
    %c0_10 = arith.constant 0 : index
    %c0_11 = arith.constant 0 : index
    %c0_12 = arith.constant 0 : index
    %14 = vector.load %arg5[%c0_9, %c0_10, %c0_11, %c0_12] : memref<1x8x32x128xf32, #tpu.memory_space<vmem>>, vector<1x8x32x128xf32>
    %15 = vector.shape_cast %14 : vector<1x8x32x128xf32> to vector<8x32x128xf32>
    %16 = vector.shape_cast %13 : vector<8x32x128xf32> to vector<1x8x32x128xf32>
    tpu.vector_store %arg5[%c0_9, %c0_10, %c0_11, %c0_12], %16 {strides = array<i32>} : memref<1x8x32x128xf32, #tpu.memory_space<vmem>>, vector<1x8x32x128xf32>,
    return
  }
  func.func @transform_0(%arg0: i32, %arg1: i32) -> (i32, i32, i32, i32) {
    %c0_i32 = arith.constant 0 : i32
    %c0_i32_0 = arith.constant 0 : i32
    %c0_i32_1 = arith.constant 0 : i32
    return %arg0, %arg1, %c0_i32, %c0_i32_0 : i32, i32, i32, i32
  }
  func.func @transform_1(%arg0: i32, %arg1: i32) -> (i32, i32, i32) {
    %c0_i32 = arith.constant 0 : i32
    %c0_i32_0 = arith.constant 0 : i32
    %c0_i32_1 = arith.constant 0 : i32
    return %arg0, %c0_i32, %c0_i32_0 : i32, i32, i32
  }
  func.func @transform_2(%arg0: i32, %arg1: i32) -> (i32, i32, i32) {
    %c0_i32 = arith.constant 0 : i32
    %c0_i32_0 = arith.constant 0 : i32
    %c0_i32_1 = arith.constant 0 : i32
    return %arg0, %c0_i32, %c0_i32_0 : i32, i32, i32
  }
  func.func @transform_3(%arg0: i32, %arg1: i32) -> (i32, i32, i32, i32) {
    %c0_i32 = arith.constant 0 : i32
    %c0_i32_0 = arith.constant 0 : i32
    %c0_i32_1 = arith.constant 0 : i32
    return %arg0, %arg1, %c0_i32, %c0_i32_0 : i32, i32, i32, i32
  }
}

</mosaic_0001>

<bundles_post_ra>
// kernel: upblock_forward.3
= control target key start
LH: loop header
LB: loop body
LE: loop exit
PB: predicated region body
PF: predicated region fallthrough
CT: control target
= control target key end

     0   :  { %s651_s12 = smov 0   ;;  %s653_s13 = smov 0   ;;  %s844_s0 = inlined_call_operand.vmem [shape: f32[2,32,32,128], index: 0, kind: input, shape index: {}]   ;;  %s845_s1 = inlined_call_operand.vmem [shape: f32[2,1,128], index: 1, kind: input, shape index: {}]   ;;  %s846_s2 = inlined_call_operand.vmem [shape: f32[2,1,128], index: 2, kind: input, shape index: {}]   ;;  %s847_s3 = inlined_call_operand.vmem [shape: f32[2,32,32,128], index: 3, kind: output, shape index: {}]  }
   0x1   :  { %s655_s14 = smov 0   ;;  %s657_s15 = smov 0  }
   0x2   :  { %s659_s16 = smov 0  }
   0x3 LB: > { %s22_s17 = sadd.s32 1, %s621_s14  ;;  %s25_s18 = sadd.s32 1, %s625_s15  ;;  %s629_s16 = sphi %s659_s16, %s13_s16   ;;  %s625_s15 = sphi %s657_s15, %s851_s15   ;;  %s621_s14 = sphi %s655_s14, %s850_s14   ;;  %s617_s13 = sphi %s653_s13, %s849_s13   ;;  %s613_s12 = sphi %s651_s12, %s848_s12  }
   0x4   : > { %p23_p0 = scmp.ge.s32.totalorder %s22_s17, 4  ;;  %p538_p1 = scmp.ge.s32.totalorder %s629_s16, 1 }
   0x5   : > { %p175_p2 = scmp.lt.s32.totalorder %s629_s16, 9 }
   0x6   : > { %s853_s17 = smov (%p23_p0, %s22_s17), 0  ;;  %s855_s18 = smov (!%p23_p0, %s25_s18), %s625_s15 }
   0x7   : > { %p176_p3 = pnand %p538_p1, %p175_p2  ;;  %p27_p4 = scmp.ge.s32.totalorder %s855_s18, 2 }
   0x8   : > { %s539_s19 = sshll.u32 (!%p176_p3), %s613_s12, 3  ;;  %p216_p5 = scmp.lt.s32.totalorder (!%p176_p3), %s617_s13, 1 }
   0x9   : > { %s857_s18 = smov (%p27_p4, %s855_s18), 0  ;;  %179 = sbr.rel (%p176_p3) target bundleno = 52 (0x34), region = 32 }
   0xa   : > { %p218_p6 = scmp.lt.s32.totalorder (!%p176_p3), %s539_s19, 31 }
  0x10   : > { %s859_s13 = smov (!%p216_p5, %s617_s13), 1  ;;  %s861_s19 = smov (!%p218_p6, %s539_s19), 31 }
  0x11   : > { %s541_s20 = sshll.u32 %s859_s13, 7  ;;  %s228_s23 = scalar_lea.vmem %s845_s1, %s859_s13 }
  0x12   : > { %s540_s24 = sshll.u32 %s861_s19, 2  ;;  %s231_s27 = scalar_lea.vmem %s846_s2, %s859_s13  ;;  %v687_v0 = vld [vmem:[%s228_s23] ss:$0 sm:$0xff] }
  0x13   : > { %s222_s28 = sadd.s32 %s541_s20, %s540_s24  ;;  %v694_v1 = vld [vmem:[%s231_s27] ss:$0 sm:$0xff] }
  0x14   : > { %s542_s29 = sshll.u32 %s222_s28, 3 }
  0x15   : > { %s692_s5 = scalar_lea.vmem %s844_s0, %s542_s29  ;;  %s717_s8 = scalar_lea.vmem %s847_s3, %s542_s29 }
  0x16   : > { %v243_v2 = vld [vmem:[%s692_s5] sm:$0xff]  ;;  %v244_v3 = vld [vmem:[%s692_s5 + $0x8] sm:$0xff]  ;;  %v245_v4 = vld [vmem:[%s692_s5 + $0x10] sm:$0xff] }
  0x17   : > { %v282_v5 = vmul.f32 %v687_v0, %v243_v2  ;;  %v283_v6 = vmul.f32 %v687_v0, %v244_v3  ;;  %v284_v7 = vmul.f32 %v687_v0, %v245_v4  ;;  %v246_v8 = vld [vmem:[%s692_s5 + $0x18] sm:$0xff]  ;;  %v247_v9 = vld [vmem:[%s692_s5 + $0x20] sm:$0xff]  ;;  %v248_v10 = vld [vmem:[%s692_s5 + $0x28] sm:$0xff] }
  0x18   : > { %v285_v11 = vmul.f32 %v687_v0, %v246_v8  ;;  %v286_v12 = vmul.f32 %v687_v0, %v247_v9  ;;  %v287_v13 = vmul.f32 %v687_v0, %v248_v10  ;;  %v249_v14 = vld [vmem:[%s692_s5 + $0x30] sm:$0xff]  ;;  %v250_v15 = vld [vmem:[%s692_s5 + $0x38] sm:$0xff]  ;;  %v251_v24 = vld [vmem:[%s692_s5 + $0x40] sm:$0xff] }
  0x19   : > { %v321_v16 = vadd.f32 %v694_v1, %v282_v5  ;;  %v322_v17 = vadd.f32 %v694_v1, %v283_v6  ;;  %v323_v18 = vadd.f32 %v694_v1, %v284_v7  ;;  %v288_v19 = vmul.f32 %v687_v0, %v249_v14  ;;  %v252_v25 = vld [vmem:[%s692_s5 + $0x48] sm:$0xff]  ;;  %v253_v26 = vld [vmem:[%s692_s5 + $0x50] sm:$0xff]  ;;  %v254_v31 = vld [vmem:[%s692_s5 + $0x58] sm:$0xff] }
  0x1a   : > { %v324_v20 = vadd.f32 %v694_v1, %v285_v11  ;;  %v325_v21 = vadd.f32 %v694_v1, %v286_v12  ;;  %v326_v22 = vadd.f32 %v694_v1, %v287_v13  ;;  %v289_v23 = vmul.f32 %v687_v0, %v250_v15  ;;  %v255_v32 = vld [vmem:[%s692_s5 + $0x60] sm:$0xff]  ;;  %v256_v33 = vld [vmem:[%s692_s5 + $0x68] sm:$0xff]  ;;  %v257_v38 = vld [vmem:[%s692_s5 + $0x70] sm:$0xff] }
  0x1b   : > { %v353_v27 = vmax.f32 %v321_v16, 0.0  ;;  %v354_v28 = vmax.f32 %v322_v17, 0.0  ;;  %v355_v29 = vmax.f32 %v323_v18, 0.0  ;;  %v327_v30 = vadd.f32 %v694_v1, %v288_v19  ;;  %v258_v43 = vld [vmem:[%s692_s5 + $0x78] sm:$0xff]  ;;  %v259_v56 = vld [vmem:[%s692_s5 + $0x80] sm:$0xff]  ;;  %v260_v57 = vld [vmem:[%s692_s5 + $0x88] sm:$0xff] }
  0x1c   : > { %v356_v34 = vmax.f32 %v324_v20, 0.0  ;;  %v357_v35 = vmax.f32 %v325_v21, 0.0  ;;  %v358_v36 = vmax.f32 %v326_v22, 0.0  ;;  %v328_v37 = vadd.f32 %v694_v1, %v289_v23  ;;  %v261_v58 = vld [vmem:[%s692_s5 + $0x90] sm:$0xff]  ;;  %v262_v63 = vld [vmem:[%s692_s5 + $0x98] sm:$0xff]  ;;  %v263_v2 = vld [vmem:[%s692_s5 + $0xa0] sm:$0xff] }
  0x1d   : > { %385 = vst [vmem:[%s717_s8] sm:$0xff] %v353_v27  ;;  %386 = vst [vmem:[%s717_s8 + $0x8] sm:$0xff] %v354_v28  ;;  %v359_v39 = vmax.f32 %v327_v30, 0.0  ;;  %v290_v40 = vmul.f32 %v687_v0, %v251_v24  ;;  %v291_v41 = vmul.f32 %v687_v0, %v252_v25  ;;  %v292_v42 = vmul.f32 %v687_v0, %v253_v26  ;;  %v264_v3 = vld [vmem:[%s692_s5 + $0xa8] sm:$0xff]  ;;  %v265_v8 = vld [vmem:[%s692_s5 + $0xb0] sm:$0xff] }
  0x1e   : > { %387 = vst [vmem:[%s717_s8 + $0x10] sm:$0xff] %v355_v29  ;;  %388 = vst [vmem:[%s717_s8 + $0x18] sm:$0xff] %v356_v34  ;;  %v360_v44 = vmax.f32 %v328_v37, 0.0  ;;  %v293_v45 = vmul.f32 %v687_v0, %v254_v31  ;;  %v294_v46 = vmul.f32 %v687_v0, %v255_v32  ;;  %v295_v47 = vmul.f32 %v687_v0, %v256_v33  ;;  %v266_v13 = vld [vmem:[%s692_s5 + $0xb8] sm:$0xff]  ;;  %v267_v26 = vld [vmem:[%s692_s5 + $0xc0] sm:$0xff] }
  0x1f   : > { %389 = vst [vmem:[%s717_s8 + $0x20] sm:$0xff] %v357_v35  ;;  %390 = vst [vmem:[%s717_s8 + $0x28] sm:$0xff] %v358_v36  ;;  %v329_v48 = vadd.f32 %v694_v1, %v290_v40  ;;  %v330_v49 = vadd.f32 %v694_v1, %v291_v41  ;;  %v331_v50 = vadd.f32 %v694_v1, %v292_v42  ;;  %v268_v27 = vld [vmem:[%s692_s5 + $0xc8] sm:$0xff]  ;;  %v269_v28 = vld [vmem:[%s692_s5 + $0xd0] sm:$0xff] }
  0x20   : > { %391 = vst [vmem:[%s717_s8 + $0x30] sm:$0xff] %v359_v39  ;;  %v296_v51 = vmul.f32 %v687_v0, %v257_v38  ;;  %392 = vst [vmem:[%s717_s8 + $0x38] sm:$0xff] %v360_v44  ;;  %v332_v52 = vadd.f32 %v694_v1, %v293_v45  ;;  %v333_v53 = vadd.f32 %v694_v1, %v294_v46  ;;  %v270_v33 = vld [vmem:[%s692_s5 + $0xd8] sm:$0xff]  ;;  %v271_v34 = vld [vmem:[%s692_s5 + $0xe0] sm:$0xff] }
  0x21   : > { %v334_v54 = vadd.f32 %v694_v1, %v295_v47  ;;  %v297_v55 = vmul.f32 %v687_v0, %v258_v43  ;;  %v361_v59 = vmax.f32 %v329_v48, 0.0  ;;  %v362_v60 = vmax.f32 %v330_v49, 0.0  ;;  %v272_v35 = vld [vmem:[%s692_s5 + $0xe8] sm:$0xff]  ;;  %v273_v40 = vld [vmem:[%s692_s5 + $0xf0] sm:$0xff]  ;;  %v274_v45 = vld [vmem:[%s692_s5 + $0xf8] sm:$0xff] }
  0x22   : > { %v363_v61 = vmax.f32 %v331_v50, 0.0  ;;  %v335_v62 = vadd.f32 %v694_v1, %v296_v51  ;;  %v364_v4 = vmax.f32 %v332_v52, 0.0  ;;  %v365_v5 = vmax.f32 %v333_v53, 0.0 }
  0x23   : > { %v366_v6 = vmax.f32 %v334_v54, 0.0  ;;  %v336_v7 = vadd.f32 %v694_v1, %v297_v55  ;;  %393 = vst [vmem:[%s717_s8 + $0x40] sm:$0xff] %v361_v59  ;;  %394 = vst [vmem:[%s717_s8 + $0x48] sm:$0xff] %v362_v60  ;;  %v298_v10 = vmul.f32 %v687_v0, %v259_v56  ;;  %v299_v11 = vmul.f32 %v687_v0, %v260_v57 }
  0x24   : > { %395 = vst [vmem:[%s717_s8 + $0x50] sm:$0xff] %v363_v61  ;;  %v367_v9 = vmax.f32 %v335_v62, 0.0  ;;  %v300_v12 = vmul.f32 %v687_v0, %v261_v58  ;;  %396 = vst [vmem:[%s717_s8 + $0x58] sm:$0xff] %v364_v4  ;;  %v301_v15 = vmul.f32 %v687_v0, %v262_v63  ;;  %v302_v16 = vmul.f32 %v687_v0, %v263_v2 }
  0x25   : > { %397 = vst [vmem:[%s717_s8 + $0x60] sm:$0xff] %v365_v5  ;;  %398 = vst [vmem:[%s717_s8 + $0x68] sm:$0xff] %v366_v6  ;;  %v368_v14 = vmax.f32 %v336_v7, 0.0  ;;  %v303_v17 = vmul.f32 %v687_v0, %v264_v3  ;;  %v337_v18 = vadd.f32 %v694_v1, %v298_v10  ;;  %v338_v19 = vadd.f32 %v694_v1, %v299_v11 }
  0x26   : > { %399 = vst [vmem:[%s717_s8 + $0x70] sm:$0xff] %v367_v9  ;;  %v339_v20 = vadd.f32 %v694_v1, %v300_v12  ;;  %v304_v21 = vmul.f32 %v687_v0, %v265_v8  ;;  %v340_v22 = vadd.f32 %v694_v1, %v301_v15  ;;  %v341_v23 = vadd.f32 %v694_v1, %v302_v16 }
  0x27   : > { %400 = vst [vmem:[%s717_s8 + $0x78] sm:$0xff] %v368_v14  ;;  %v342_v24 = vadd.f32 %v694_v1, %v303_v17  ;;  %v305_v25 = vmul.f32 %v687_v0, %v266_v13  ;;  %v369_v29 = vmax.f32 %v337_v18, 0.0  ;;  %v370_v30 = vmax.f32 %v338_v19, 0.0 }
  0x28   : > { %v371_v31 = vmax.f32 %v339_v20, 0.0  ;;  %v343_v32 = vadd.f32 %v694_v1, %v304_v21  ;;  %v372_v36 = vmax.f32 %v340_v22, 0.0  ;;  %v373_v37 = vmax.f32 %v341_v23, 0.0 }
  0x29   : > { %v374_v38 = vmax.f32 %v342_v24, 0.0  ;;  %v344_v39 = vadd.f32 %v694_v1, %v305_v25  ;;  %401 = vst [vmem:[%s717_s8 + $0x80] sm:$0xff] %v369_v29  ;;  %402 = vst [vmem:[%s717_s8 + $0x88] sm:$0xff] %v370_v30  ;;  %v306_v42 = vmul.f32 %v687_v0, %v267_v26  ;;  %v307_v43 = vmul.f32 %v687_v0, %v268_v27 }
  0x2a   : > { %403 = vst [vmem:[%s717_s8 + $0x90] sm:$0xff] %v371_v31  ;;  %v375_v41 = vmax.f32 %v343_v32, 0.0  ;;  %v308_v44 = vmul.f32 %v687_v0, %v269_v28  ;;  %404 = vst [vmem:[%s717_s8 + $0x98] sm:$0xff] %v372_v36  ;;  %v309_v47 = vmul.f32 %v687_v0, %v270_v33  ;;  %v310_v48 = vmul.f32 %v687_v0, %v271_v34 }
  0x2b   : > { %405 = vst [vmem:[%s717_s8 + $0xa0] sm:$0xff] %v373_v37  ;;  %406 = vst [vmem:[%s717_s8 + $0xa8] sm:$0xff] %v374_v38  ;;  %v376_v46 = vmax.f32 %v344_v39, 0.0  ;;  %v311_v49 = vmul.f32 %v687_v0, %v272_v35  ;;  %v345_v50 = vadd.f32 %v694_v1, %v306_v42  ;;  %v346_v51 = vadd.f32 %v694_v1, %v307_v43 }
  0x2c   : > { %407 = vst [vmem:[%s717_s8 + $0xb0] sm:$0xff] %v375_v41  ;;  %v347_v52 = vadd.f32 %v694_v1, %v308_v44  ;;  %v312_v53 = vmul.f32 %v687_v0, %v273_v40  ;;  %v348_v54 = vadd.f32 %v694_v1, %v309_v47  ;;  %v349_v55 = vadd.f32 %v694_v1, %v310_v48 }
  0x2d   : > { %408 = vst [vmem:[%s717_s8 + $0xb8] sm:$0xff] %v376_v46  ;;  %v350_v56 = vadd.f32 %v694_v1, %v311_v49  ;;  %v313_v57 = vmul.f32 %v687_v0, %v274_v45  ;;  %v377_v58 = vmax.f32 %v345_v50, 0.0  ;;  %v378_v59 = vmax.f32 %v346_v51, 0.0 }
  0x2e   : > { %v379_v60 = vmax.f32 %v347_v52, 0.0  ;;  %v351_v61 = vadd.f32 %v694_v1, %v312_v53  ;;  %v380_v62 = vmax.f32 %v348_v54, 0.0  ;;  %v381_v63 = vmax.f32 %v349_v55, 0.0 }
  0x2f   : > { %v382_v2 = vmax.f32 %v350_v56, 0.0  ;;  %v352_v3 = vadd.f32 %v694_v1, %v313_v57  ;;  %409 = vst [vmem:[%s717_s8 + $0xc0] sm:$0xff] %v377_v58  ;;  %410 = vst [vmem:[%s717_s8 + $0xc8] sm:$0xff] %v378_v59 }
  0x30   : > { %411 = vst [vmem:[%s717_s8 + $0xd0] sm:$0xff] %v379_v60  ;;  %v383_v4 = vmax.f32 %v351_v61, 0.0  ;;  %412 = vst [vmem:[%s717_s8 + $0xd8] sm:$0xff] %v380_v62 }
  0x31   : > { %413 = vst [vmem:[%s717_s8 + $0xe0] sm:$0xff] %v381_v63  ;;  %414 = vst [vmem:[%s717_s8 + $0xe8] sm:$0xff] %v382_v2  ;;  %v384_v0 = vmax.f32 %v352_v3, 0.0 }
  0x32   : > { %415 = vst [vmem:[%s717_s8 + $0xf0] sm:$0xff] %v383_v4 }
  0x33   : > { %416 = vst [vmem:[%s717_s8 + $0xf8] sm:$0xff] %v384_v0 }
  0x34 PF: > { %s13_s16 = sadd.s32 1, %s629_s16   ;;  %s848_s12 = smov %s621_s14 }
  0x35   : > { %p10_p7 = scmp.ge.s32.totalorder %s13_s16, 10   ;;  %s849_s13 = smov %s625_s15 }
  0x36   : > { %s850_s14 = smov %s853_s17  ;;  %s851_s15 = smov %s857_s18 }
  0x37   :  { %12 = sbr.rel (!%p10_p7) target bundleno = 3 (0x3), region = 68 }

// kernel: upblock_forward.2
= control target key start
LH: loop header
LB: loop body
LE: loop exit
PB: predicated region body
PF: predicated region fallthrough
CT: control target
= control target key end

     0   :  { %s4685_s12 = smov 0   ;;  %s4687_s13 = smov 0   ;;  %s5592_s0 = inlined_call_operand.vmem [shape: bf16[2,18,18,128], index: 0, kind: input, shape index: {}]   ;;  %s5593_s1 = inlined_call_operand.vmem [shape: bf16[16,128,128], index: 1, kind: input, shape index: {}]   ;;  %s5594_s2 = inlined_call_operand.vmem [shape: f32[2,16,2,16,256], index: 2, kind: output, shape index: {0}]   ;;  %s5595_s3 = inlined_call_operand.vmem [shape: f32[2,4,2,128], index: 3, kind: output, shape index: {1}]  }
   0x1   :  { %s4689_s14 = smov 0   ;;  %s4691_s15 = smov 0  }
   0x2   :  { %s4693_s16 = smov 0  }
   0x3 LB: > { %s23_s17 = sadd.s32 1, %s4655_s14  ;;  %s26_s18 = sadd.s32 1, %s4659_s15  ;;  %s4663_s16 = sphi %s4693_s16, %s14_s16   ;;  %s4659_s15 = sphi %s4691_s15, %s5603_s15   ;;  %s4655_s14 = sphi %s4689_s14, %s5602_s14   ;;  %s4651_s13 = sphi %s4687_s13, %s5601_s13   ;;  %s4647_s12 = sphi %s4685_s12, %s5600_s12  }
   0x4   : > { %p24_p0 = scmp.ge.s32.totalorder %s23_s17, 4  ;;  %p3298_p1 = scmp.ge.s32.totalorder %s4663_s16, 1 }
   0x5   : > { %p156_p2 = scmp.lt.s32.totalorder %s4663_s16, 9 }
   0x6   : > { %s5605_s17 = smov (%p24_p0, %s23_s17), 0  ;;  %s5607_s18 = smov (!%p24_p0, %s26_s18), %s4659_s15 }
   0x7   : > { %p157_p3 = pnand %p3298_p1, %p156_p2  ;;  %p28_p4 = scmp.ge.s32.totalorder %s5607_s18, 2 }
   0x8   : > { %v4485_v0 = vld [vmem:[%s5593_s1 + $0x40] sm:$0xff] (!%p157_p3)   ;;  %p193_p5 = scmp.lt.s32.totalorder (!%p157_p3), %s4651_s13, 1  ;;  %v4487_v2 = vld [vmem:[%s5593_s1 + $0x48] sm:$0xff] (!%p157_p3)   ;;  %v4489_v4 = vld [vmem:[%s5593_s1 + $0x50] sm:$0xff] (!%p157_p3)   ;;  %s3771_s9 = smul.u32 (!%p157_p3), 48, %s4647_s12  ;;  %vm1141_vm0 = vcmask (!%p157_p3), 1042432  }
   0x9   : > { %s5609_s18 = smov (%p28_p4, %s5607_s18), 0  ;;  %160 = sbr.rel (%p157_p3) target bundleno = 515 (0x203), region = 28 }
   0xa   : > { %v4486_v1 = vld [vmem:[%s5593_s1 + $0x140] sm:$0xff] (!%p157_p3)   ;;  %3964 = vmatprep.subr.bf16.mxu0 (!%p157_p3), %v4485_v0  ;;  %v4488_v3 = vld [vmem:[%s5593_s1 + $0x148] sm:$0xff] (!%p157_p3)   ;;  %v4490_v5 = vld [vmem:[%s5593_s1 + $0x150] sm:$0xff] (!%p157_p3)   ;;  %vm1142_vm1 = vcmask (!%p157_p3), 1046532   ;;  %vm282_vm2 = vsmask.f32 (!%p157_p3), 3328 }
   0xb   : > { %4060 = vmatprep.subr.bf16.mxu1 (!%p157_p3), %v4486_v1  ;;  %3965 = vmatpush3.bf16.msra.mxu0 (!%p157_p3), %v4485_v0  ;;  %v4491_v6 = vld [vmem:[%s5593_s1 + $0x58] sm:$0xff] (!%p157_p3)   ;;  %v4493_v8 = vld [vmem:[%s5593_s1 + $0x60] sm:$0xff] (!%p157_p3)   ;;  %v4495_v10 = vld [vmem:[%s5593_s1 + $0x68] sm:$0xff] (!%p157_p3)   ;;  %vm283_vm3 = vsmask.f32 (!%p157_p3), 7440  ;;  %p211_p7 = scmp.lt.s32.totalorder (!%p157_p3), %s4647_s12, 3 }
   0xc   : > { %4061 = vmatpush3.bf16.msra.mxu1 (!%p157_p3), %v4486_v1  ;;  %3966 = vmatprep.subr.bf16.mxu0 (!%p157_p3), %v4487_v2  ;;  %v4492_v7 = vld [vmem:[%s5593_s1 + $0x158] sm:$0xff] (!%p157_p3)   ;;  %v4494_v9 = vld [vmem:[%s5593_s1 + $0x160] sm:$0xff] (!%p157_p3)   ;;  %v4496_v11 = vld [vmem:[%s5593_s1 + $0x168] sm:$0xff] (!%p157_p3)   ;;  %vm3144_vm6 = vcmask (!%p157_p3), 1040384  }
   0xd   : > { %4062 = vmatprep.subr.bf16.mxu1 (!%p157_p3), %v4488_v3  ;;  %v4497_v17 = vld [vmem:[%s5593_s1 + $0x70] sm:$0xff] (!%p157_p3)   ;;  %vm4778_vm4 = vmor (!%p157_p3), %vm1141_vm0, %vm1142_vm1  ;;  %v4499_v45 = vld [vmem:[%s5593_s1 + $0x78] sm:$0xff] (!%p157_p3)  }
   0xe   : > { %v4498_v26 = vld [vmem:[%s5593_s1 + $0x170] sm:$0xff] (!%p157_p3)   ;;  %vm4794_vm5 = vmor (!%p157_p3), %vm282_vm2, %vm283_vm3  ;;  %v4500_v50 = vld [vmem:[%s5593_s1 + $0x178] sm:$0xff] (!%p157_p3)  }
   0xf   : > { %3967 = vmatpush3.bf16.msra.mxu0 (!%p157_p3), %v4487_v2  ;;  %v4501_v63 = vld [vmem:[%s5593_s1] sm:$0xff] (!%p157_p3)  }
  0x10   : > { %s5611_s13 = smov (!%p193_p5, %s4651_s13), 1  ;;  %4063 = vmatpush3.bf16.msra.mxu1 %v4488_v3  ;;  %3968 = vmatprep.subr.bf16.mxu0 %v4489_v4  ;;  %v4502_v3 = vld [vmem:[%s5593_s1 + $0x100] sm:$0xff]  }
  0x11   : > { %s4444_s4 = smul.u32 216, %s5611_s13  ;;  %4064 = vmatprep.subr.bf16.mxu1 %v4490_v5  ;;  %s3302_s6 = sshll.u32 %s5611_s13, 7 }
  0x13   : > { %s197_s19 = scalar_lea.vmem %s5592_s0, %s4444_s4  ;;  %3969 = vmatpush3.bf16.msra.mxu0 %v4489_v4  ;;  %s3300_s4 = sshll.u32 %s4647_s12, 2 }
  0x14   : > { %4065 = vmatpush3.bf16.msra.mxu1 %v4490_v5  ;;  %3970 = vmatprep.subr.bf16.mxu0 %v4491_v6  ;;  %s4754_s24 = scalar_lea.vmem %s197_s19, %s3771_s9  ;;  %p201_p6 = scmp.lt.s32.totalorder %s3300_s4, 15 }
  0x15   : > { %4066 = vmatprep.subr.bf16.mxu1 %v4492_v7  ;;  %v4763_v12 = vld [vmem:[%s4754_s24] sm:$0xf]  ;;  %v4766_v13 = vld [vmem:[%s4754_s24 + $0x4] sm:$0xf]  ;;  %v224_v14 = vld [vmem:[%s4754_s24 + $0x8] sm:$0x1] }
  0x16   : > { %v286_v15 = vshrl.u32 %v4763_v12, 16  ;;  %v289_v16 = vshll.u32 %v4763_v12, 16  ;;  %v295_v18 = vshll.u32 %v4766_v13, 16  ;;  %v299_v19 = vshrl.u32 %v4766_v13, 16  ;;  %v4790_v34 = vld [vmem:[%s4754_s24 + $0xc] sm:$0xf] }
  0x17   : > { %3971 = vmatpush3.bf16.msra.mxu0 %v4491_v6  ;;  %v305_v20 = vshll.u32 %v224_v14, 16  ;;  %v3449_v24 = vrot.slane %v4763_v12, 9  ;;  %v1146_v25 = vrot.slane %v4766_v13, 5  ;;  %v1149_v29 = vrot.slane %v224_v14, 5  ;;  %v4799_v37 = vld [vmem:[%s4754_s24 + $0x10] sm:$0xf] }
  0x18   : > { %4067 = vmatpush3.bf16.msra.mxu1 %v4492_v7  ;;  %3972 = vmatprep.subr.bf16.mxu0 %v4493_v8  ;;  %v288_v22 = vrot.slane %v286_v15, 4  ;;  %v291_v23 = vrot.slane %v289_v16, 5  ;;  %v297_v27 = vrot.slane %v295_v18, 5  ;;  %v301_v28 = vrot.slane %v299_v19, 4  ;;  %v227_v38 = vld [vmem:[%s4754_s24 + $0x14] sm:$0x1] }
  0x19   : > { %4068 = vmatprep.subr.bf16.mxu1 %v4494_v9  ;;  %v307_v31 = vrot.slane %v305_v20, 5  ;;  %v1147_v32 = vsel %vm4778_vm4, %v3449_v24, %v1146_v25  ;;  %v1148_v33 = vrot.slane %v1146_v25, 4  ;;  %v310_v39 = vshrl.u32 %v4790_v34, 16  ;;  %v4505_v14 = vld [vmem:[%s5593_s1 + $0x10] sm:$0xff]   ;;  %v4850_v15 = vld [vmem:[%s4754_s24 + $0x18] sm:$0xf] }
  0x1a   : > { %v292_v30 = vor.u32 %v291_v23, %v288_v22  ;;  %v302_v36 = vor.u32 %v301_v28, %v297_v27  ;;  %v313_v40 = vshll.u32 %v4790_v34, 16  ;;  %v319_v43 = vshll.u32 %v4799_v37, 16  ;;  %v4853_v16 = vld [vmem:[%s4754_s24 + $0x1c] sm:$0xf]  ;;  %v4506_v20 = vld [vmem:[%s5593_s1 + $0x110] sm:$0xff]   ;;  %s5613_s4 = smov (!%p201_p6, %s3300_s4), 15 }
  0x1b   : > { %3973 = vmatpush3.bf16.msra.mxu0 %v4493_v8  ;;  %v1150_v42 = vsel %vm4778_vm4, %v1148_v33, %v1149_v29  ;;  %v323_v44 = vshrl.u32 %v4799_v37, 16  ;;  %v312_v48 = vrot.slane %v310_v39, 4  ;;  %v329_v54 = vshll.u32 %v227_v38, 16  ;;  %v4507_v29 = vld [vmem:[%s5593_s1 + $0x18] sm:$0xff]   ;;  %s3301_s5 = sshll.u32 %s5613_s4, 3  ;;  %s5615_s12 = smov (!%p211_p7, %s4647_s12), 3 }
  0x1c   : > { %4069 = vmatpush3.bf16.msra.mxu1 %v4494_v9  ;;  %3974 = vmatprep.subr.bf16.mxu0 %v4495_v10  ;;  %v293_v41 = vrot.slane %v292_v30, 4  ;;  %v303_v46 = vrot.slane %v302_v36, 4  ;;  %v3469_v47 = vcombine.low %v1147_v32, %v1150_v42  ;;  %v315_v49 = vrot.slane %v313_v40, 5  ;;  %v4871_v40 = vld [vmem:[%s4754_s24 + $0x24] sm:$0xf]  ;;  %s205_s7 = sadd.s32 %s3302_s6, %s3301_s5  ;;  %s3304_s19 = sshll.u32 %s5611_s13, 2 }
  0x1d   : > { %4070 = vmatprep.subr.bf16.mxu1 %v4496_v11  ;;  %v321_v52 = vrot.slane %v319_v43, 5  ;;  %v325_v53 = vrot.slane %v323_v44, 4  ;;  %v3450_v57 = vrot.slane %v4790_v34, 9  ;;  %v1153_v58 = vrot.slane %v4799_v37, 5  ;;  %v4874_v42 = vld [vmem:[%s4754_s24 + $0x28] sm:$0xf]  ;;  %s214_s20 = sadd.s32 %s3304_s19, %s5615_s12 }
  0x1e   : > { %v298_v51 = vsel %vm4794_vm5, %v293_v41, %v297_v27  ;;  %v308_v55 = vsel %vm4794_vm5, %v303_v46, %v307_v31  ;;  %4076 = vmatprep.mubr.bf16.mxu1 %v3469_v47  ;;  %v316_v56 = vor.u32 %v315_v49, %v312_v48  ;;  %v331_v61 = vrot.slane %v329_v54, 5  ;;  %v233_v43 = vld [vmem:[%s4754_s24 + $0x2c] sm:$0x1]  ;;  %v4508_v46 = vld [vmem:[%s5593_s1 + $0x118] sm:$0xff]   ;;  %s3303_s8 = sshll.u32 %s205_s7, 3 }
  0x1f   : > { %3975 = vmatpush3.bf16.msra.mxu0 %v4495_v10  ;;  %v4820_v59 = vcombine.low %v298_v51, %v308_v55  ;;  %v326_v60 = vor.u32 %v325_v53, %v321_v52  ;;  %v1156_v62 = vrot.slane %v227_v38, 5  ;;  %v1154_v1 = vsel %vm4778_vm4, %v3450_v57, %v1153_v58  ;;  %v4503_v10 = vld [vmem:[%s5593_s1 + $0x8] sm:$0xff]   ;;  %v4509_v51 = vld [vmem:[%s5593_s1 + $0x20] sm:$0xff]   ;;  %s5531_s11 = scalar_lea.vmem %s5594_s2, %s3303_s8 }
  0x20   : > { %4071 = vmatpush3.bf16.msra.mxu1 %v4496_v11  ;;  %3976 = vmatprep.subr.bf16.mxu0 %v4497_v17  ;;  %v317_v0 = vrot.slane %v316_v56, 4  ;;  %v1155_v2 = vrot.slane %v1153_v58, 4  ;;  %v4504_v11 = vld [vmem:[%s5593_s1 + $0x108] sm:$0xff]   ;;  %v334_v18 = vshrl.u32 %v4850_v15, 16  ;;  %v337_v19 = vshll.u32 %v4850_v15, 16  ;;  %v4510_v56 = vld [vmem:[%s5593_s1 + $0x120] sm:$0xff]  }
  0x21   : > { %4072 = vmatprep.subr.bf16.mxu1 %v4498_v26  ;;  %3980 = vmatprep.mubr.bf16.mxu0 %v4820_v59  ;;  %v327_v4 = vrot.slane %v326_v60, 4  ;;  %v343_v22 = vshll.u32 %v4853_v16, 16  ;;  %v347_v23 = vshrl.u32 %v4853_v16, 16  ;;  %v3451_v27 = vrot.slane %v4850_v15, 9 }
  0x22   : > { %v322_v5 = vsel %vm4794_vm5, %v317_v0, %v321_v52  ;;  %v1157_v6 = vsel %vm4778_vm4, %v1155_v2, %v1156_v62  ;;  %v336_v25 = vrot.slane %v334_v18, 4  ;;  %v1160_v28 = vrot.slane %v4853_v16, 5  ;;  %v4512_v18 = vld [vmem:[%s5593_s1 + $0x128] sm:$0xff]  }
  0x23   : > { %3977 = vmatpush3.bf16.msra.mxu0 %v4497_v17  ;;  %v332_v7 = vsel %vm4794_vm5, %v327_v4, %v331_v61  ;;  %v3470_v8 = vcombine.low %v1154_v1, %v1157_v6  ;;  %v230_v17 = vld [vmem:[%s4754_s24 + $0x20] sm:$0x1]  ;;  %v345_v30 = vrot.slane %v343_v22, 5  ;;  %v349_v31 = vrot.slane %v347_v23, 4 }
  0x24   : > { %4073 = vmatpush3.bf16.msra.mxu1 %v4498_v26  ;;  %3978 = vmatprep.subr.bf16.mxu0 %v4499_v45  ;;  %v4837_v9 = vcombine.low %v322_v5, %v332_v7  ;;  %v353_v24 = vshll.u32 %v230_v17, 16  ;;  %v339_v26 = vrot.slane %v337_v19, 5  ;;  %v1163_v32 = vrot.slane %v230_v17, 5 }
  0x25   : > { %4074 = vmatprep.subr.bf16.mxu1 %v4500_v50  ;;  %v1161_v38 = vsel %vm4778_vm4, %v3451_v27, %v1160_v28  ;;  %v1162_v39 = vrot.slane %v1160_v28, 4  ;;  %v350_v41 = vor.u32 %v349_v31, %v345_v30  ;;  %v358_v44 = vshrl.u32 %v4871_v40, 16  ;;  %v4940_v27 = vld [vmem:[%s4754_s24 + $0xc] sm:$0xf]  ;;  %v4943_v28 = vld [vmem:[%s4754_s24 + $0x10] sm:$0xf] }
  0x26   : > { %v340_v33 = vor.u32 %v339_v26, %v336_v25  ;;  %v355_v36 = vrot.slane %v353_v24, 5  ;;  %v367_v49 = vshll.u32 %v4874_v42, 16  ;;  %v377_v61 = vshll.u32 %v233_v43, 16  ;;  %v4513_v24 = vld [vmem:[%s5593_s1 + $0x30] sm:$0xff]   ;;  %v4518_v26 = vld [vmem:[%s5593_s1 + $0x80] sm:$0xff]  }
  0x27   : > { %3979 = vmatpush3.bf16.msra.mxu0 %v4499_v45  ;;  %v361_v45 = vshll.u32 %v4871_v40, 16  ;;  %v1164_v48 = vsel %vm4778_vm4, %v1162_v39, %v1163_v32  ;;  %v351_v52 = vrot.slane %v350_v41, 4  ;;  %v360_v54 = vrot.slane %v358_v44, 4  ;;  %v4514_v25 = vld [vmem:[%s5593_s1 + $0x130] sm:$0xff]   ;;  %v4521_v41 = vld [vmem:[%s5593_s1 + $0x88] sm:$0xff]  }
  0x28   : > { %4075 = vmatpush3.bf16.msra.mxu1 %v4500_v50  ;;  %3988 = vmatprep.subr.bf16.mxu0 %v4501_v63  ;;  %v341_v47 = vrot.slane %v340_v33, 4  ;;  %v371_v50 = vshrl.u32 %v4874_v42, 16  ;;  %v3471_v53 = vcombine.low %v1161_v38, %v1164_v48  ;;  %v369_v58 = vrot.slane %v367_v49, 5  ;;  %v4952_v39 = vld [vmem:[%s4754_s24 + $0x14] sm:$0x1] }
  0x29   : > { %4084 = vmatprep.subr.bf16.mxu1 %v4502_v3  ;;  %v363_v55 = vrot.slane %v361_v45, 5  ;;  %v356_v62 = vsel %vm4794_vm5, %v351_v52, %v355_v36  ;;  %v3452_v0 = vrot.slane %v4871_v40, 9  ;;  %v1167_v1 = vrot.slane %v4874_v42, 5 }
  0x2a   : > { %3981 = vmatmul.mubr.bf16.vlgmr.msra.gmra.mrb[0].mxu0 %v4837_v9  ;;  %v346_v57 = vsel %vm4794_vm5, %v341_v47, %v345_v30  ;;  %v373_v60 = vrot.slane %v371_v50, 4  ;;  %v379_v4 = vrot.slane %v377_v61, 5  ;;  %v1170_v5 = vrot.slane %v233_v43, 5  ;;  %v4523_v50 = vld [vmem:[%s5593_s1 + $0x90] sm:$0xff]  }
  0x2b   : > { %3989 = vmatpush3.bf16.msra.mxu0 %v4501_v63  ;;  %4077 = vmatmul.mubr.bf16.vlgmr.msra.gmra.mrb[0].mxu1 %v3470_v8  ;;  %v364_v63 = vor.u32 %v363_v55, %v360_v54  ;;  %v4898_v2 = vcombine.low %v346_v57, %v356_v62  ;;  %v1168_v7 = vsel %vm4778_vm4, %v3452_v0, %v1167_v1  ;;  %v1169_v8 = vrot.slane %v1167_v1, 4  ;;  %v4527_v62 = vld [vmem:[%s5593_s1 + $0xa0] sm:$0xff]  }
  0x2c   : > { %4085 = vmatpush3.bf16.msra.mxu1 %v4502_v3  ;;  %3990 = vmatprep.subr.bf16.mxu0 %v4503_v10  ;;  %v374_v3 = vor.u32 %v373_v60, %v369_v58  ;;  %v3365_v23 = vcombine.low %v4763_v12, %v4766_v13  ;;  %v4515_v12 = vld [vmem:[%s5593_s1 + $0x38] sm:$0xff]   ;;  %v830_v30 = vshll.u32 %v4940_v27, 16  ;;  %v3366_v31 = vcombine.low %v4790_v34, %v4799_v37  ;;  %v4522_v34 = vld [vmem:[%s5593_s1 + $0x188] sm:$0xff]  }
  0x2d   : > { %4086 = vmatprep.subr.bf16.mxu1 %v4504_v11  ;;  %4080 = vmatprep.mubr.bf16.mxu1 %v3471_v53  ;;  %v365_v6 = vrot.slane %v364_v63, 4  ;;  %v1171_v17 = vsel %vm4778_vm4, %v1169_v8, %v1170_v5  ;;  %v4516_v13 = vld [vmem:[%s5593_s1 + $0x138] sm:$0xff]   ;;  %v836_v32 = vshll.u32 %v4943_v28, 16  ;;  %v840_v33 = vshrl.u32 %v4943_v28, 16  ;;  %v4528_v63 = vld [vmem:[%s5593_s1 + $0x1a0] sm:$0xff]  }
  0x2e   : > { %3984 = vmatprep.mubr.bf16.mxu0 %v4898_v2  ;;  %v832_v38 = vrot.slane %v830_v30, 5  ;;  %v846_v45 = vshll.u32 %v4952_v39, 16  ;;  %v3367_v37 = vcombine.low %v4850_v15, %v4853_v16  ;;  %v4524_v15 = vld [vmem:[%s5593_s1 + $0x190] sm:$0xff]   ;;  %v4971_v16 = vld [vmem:[%s4754_s24 + $0x18] sm:$0xf]  ;;  %v3368_v52 = vcombine.low %v4871_v40, %v4874_v42 }
  0x2f   : > { %3991 = vmatpush3.bf16.msra.mxu0 %v4503_v10  ;;  %v4511_v10 = vld [vmem:[%s5593_s1 + $0x28] sm:$0xff]   ;;  %v838_v43 = vrot.slane %v836_v32, 5  ;;  %v842_v44 = vrot.slane %v840_v33, 4  ;;  %v4980_v53 = vld [vmem:[%s4754_s24 + $0x1c] sm:$0xf]  ;;  %v4991_v57 = vcombine.low %v4940_v27, %v4943_v28  ;;  %v851_v40 = vshrl.u32 %v4971_v16, 16 }
  0x30   : > { %4087 = vmatpush3.bf16.msra.mxu1 %v4504_v11  ;;  %3992 = vmatprep.subr.bf16.mxu0 %v4505_v14  ;;  %v375_v11 = vrot.slane %v374_v3, 4  ;;  %v848_v49 = vrot.slane %v846_v45, 5  ;;  %v854_v42 = vshll.u32 %v4971_v16, 16  ;;  %v860_v60 = vshll.u32 %v4980_v53, 16  ;;  %v5011_v3 = vld [vmem:[%s4754_s24 + $0x28] sm:$0xf] }
  0x31   : > { %4088 = vmatprep.subr.bf16.mxu1 %v4506_v20  ;;  %v843_v47 = vor.u32 %v842_v44, %v838_v43  ;;  %v853_v0 = vrot.slane %v851_v40, 4  ;;  %v4532_v30 = vld [vmem:[%s5593_s1 + $0xb0] sm:$0xff]  }
  0x32   : > { %v380_v19 = vsel %vm4794_vm5, %v375_v11, %v379_v4  ;;  %v856_v1 = vrot.slane %v854_v42, 5  ;;  %v5015_v4 = vld [vmem:[%s4754_s24 + $0x20] sm:$0x1]  ;;  %v5017_v5 = vrot.slane %v860_v60, 5  ;;  %v888_v11 = vshrl.u32 %v5011_v3, 16 }
  0x33   : > { %3993 = vmatpush3.bf16.msra.mxu0 %v4505_v14  ;;  %v370_v14 = vsel %vm4794_vm5, %v365_v6, %v369_v58  ;;  %v864_v58 = vshrl.u32 %v4980_v53, 16  ;;  %v5074_v60 = vcombine.low %v4971_v16, %v4980_v53 }
  0x34   : > { %4089 = vmatpush3.bf16.msra.mxu1 %v4506_v20  ;;  %3994 = vmatprep.subr.bf16.mxu0 %v4507_v29  ;;  %v3472_v20 = vcombine.low %v1168_v7, %v1171_v17  ;;  %v4915_v22 = vcombine.low %v370_v14, %v380_v19  ;;  %v4529_v14 = vld [vmem:[%s5593_s1 + $0xa8] sm:$0xff]   ;;  %v5027_v17 = vld [vmem:[%s4754_s24 + $0x30] sm:$0xf]  ;;  %v857_v19 = vor.u32 %v856_v1, %v853_v0 }
  0x35   : > { %4090 = vmatprep.subr.bf16.mxu1 %v4508_v46  ;;  %v866_v6 = vrot.slane %v864_v58, 4  ;;  %v4539_v58 = vld [vmem:[%s5593_s1 + $0x1c0] sm:$0xff]   ;;  %v4541_v0 = vld [vmem:[%s5593_s1 + $0xc8] sm:$0xff]  }
  0x36   : > { %4081 = vmatmul.mubr.bf16.gmra.mrb[4].mxu1 %v3472_v20  ;;  %3985 = vmatmul.mubr.bf16.gmra.mrb[4].mxu0 %v4915_v22  ;;  %v870_v20 = vshll.u32 %v5015_v4, 16 }
  0x37   : > { %3995 = vmatpush3.bf16.msra.mxu0 %v4507_v29  ;;  %4004 = vmatprep.mubr.bf16.mxu0 %v3365_v23  ;;  %v827_v29 = vshrl.u32 %v4940_v27, 16  ;;  %v867_v23 = vor.u32 %v866_v6, %v5017_v5 }
  0x38   : > { %4091 = vmatpush3.bf16.msra.mxu1 %v4508_v46  ;;  %3996 = vmatprep.subr.bf16.mxu0 %v4509_v51 }
  0x39   : > { %4092 = vmatprep.subr.bf16.mxu1 %v4510_v56  ;;  %4100 = vmatprep.mubr.bf16.mxu1 %v4820_v59  ;;  %v4519_v59 = vld [vmem:[%s5593_s1 + $0x180] sm:$0xff]   ;;  %v829_v36 = vrot.slane %v827_v29, 4  ;;  %v902_v29 = vshll.u32 %v5027_v17, 16 }
  0x3b   : > { %3997 = vmatpush3.bf16.msra.mxu0 %v4509_v51  ;;  %v833_v46 = vor.u32 %v832_v38, %v829_v36  ;;  %v844_v51 = vrot.slane %v843_v47, 4  ;;  %v858_v36 = vrot.slane %v857_v19, 4  ;;  %v872_v38 = vrot.slane %v870_v20, 5  ;;  %v5055_v47 = vld [vmem:[%s4754_s24 + $0x38] sm:$0x1]  ;;  %v4543_v20 = vld [vmem:[%s5593_s1 + $0xd0] sm:$0xff]  }
  0x3c   : > { %4093 = vmatpush3.bf16.msra.mxu1 %v4510_v56  ;;  %3998 = vmatprep.subr.bf16.mxu0 %v4511_v10  ;;  %v4526_v56 = vld [vmem:[%s5593_s1 + $0x198] sm:$0xff]   ;;  %v1578_v19 = vrot.slane %v4952_v39, 5 }
  0x3d   : > { %4094 = vmatprep.subr.bf16.mxu1 %v4512_v18  ;;  %v834_v48 = vrot.slane %v833_v46, 4  ;;  %v849_v55 = vsel %vm4794_vm5, %v844_v51, %v848_v49  ;;  %v904_v46 = vrot.slane %v902_v29, 5  ;;  %v4546_v29 = vld [vmem:[%s5593_s1 + $0x1d8] sm:$0xff]  }
  0x3f   : > { %3999 = vmatpush3.bf16.msra.mxu0 %v4511_v10  ;;  %v839_v54 = vsel %vm4794_vm5, %v834_v48, %v838_v43  ;;  %v884_v10 = vshll.u32 %v5011_v3, 16  ;;  %v868_v43 = vrot.slane %v867_v23, 4 }
  0x40   : > { %4095 = vmatpush3.bf16.msra.mxu1 %v4512_v18  ;;  %4000 = vmatprep.subr.bf16.mxu0 %v4513_v24  ;;  %v4997_v61 = vcombine.low %v839_v54, %v849_v55  ;;  %v4530_v18 = vld [vmem:[%s5593_s1 + $0x1a8] sm:$0xff]   ;;  %v4538_v55 = vld [vmem:[%s5593_s1 + $0xc0] sm:$0xff]  }
  0x41   : > { %4096 = vmatprep.subr.bf16.mxu1 %v4514_v25 }
  0x43   : > { %4001 = vmatpush3.bf16.msra.mxu0 %v4513_v24 }
  0x44   : > { %4097 = vmatpush3.bf16.msra.mxu1 %v4514_v25  ;;  %4002 = vmatprep.subr.bf16.mxu0 %v4515_v12 }
  0x45   : > { %4098 = vmatprep.subr.bf16.mxu1 %v4516_v13 }
  0x47   : > { %4003 = vmatpush3.bf16.msra.mxu0 %v4515_v12  ;;  %v5038_v12 = vld [vmem:[%s4754_s24 + $0x2c] sm:$0x1] }
  0x48   : > { %4099 = vmatpush3.bf16.msra.mxu1 %v4516_v13  ;;  %4012 = vmatprep.subr.bf16.mxu0 %v4518_v26  ;;  %v886_v13 = vrot.slane %v884_v10, 5  ;;  %v894_v44 = vshll.u32 %v5038_v12, 16 }
  0x49   : > { %4108 = vmatprep.subr.bf16.mxu1 %v4519_v59 }
  0x4a   : > { %4005 = vmatmul.mubr.bf16.vlgmr.msra.gmra.mrb[0].mxu0 %v3366_v31  ;;  %v4533_v31 = vld [vmem:[%s5593_s1 + $0x1b0] sm:$0xff]   ;;  %v896_v51 = vrot.slane %v894_v44, 5  ;;  %v4555_v44 = vld [vmem:[%s5593_s1 + $0xf8] sm:$0xff]  }
  0x4b   : > { %4013 = vmatpush3.bf16.msra.mxu0 %v4518_v26  ;;  %4101 = vmatmul.mubr.bf16.vlgmr.msra.gmra.mrb[0].mxu1 %v4837_v9  ;;  %v4525_v9 = vld [vmem:[%s5593_s1 + $0x98] sm:$0xff]   ;;  %v890_v26 = vrot.slane %v888_v11, 4 }
  0x4c   : > { %4109 = vmatpush3.bf16.msra.mxu1 %v4519_v59  ;;  %4014 = vmatprep.subr.bf16.mxu0 %v4521_v41  ;;  %v899_v59 = vshrl.u32 %v5027_v17, 16 }
  0x4d   : > { %4110 = vmatprep.subr.bf16.mxu1 %v4522_v34  ;;  %4008 = vmatprep.mubr.bf16.mxu0 %v3367_v37 }
  0x4e   : > { %4104 = vmatprep.mubr.bf16.mxu1 %v4898_v2  ;;  %v5008_v2 = vld [vmem:[%s4754_s24 + $0x24] sm:$0xf]  ;;  %v901_v37 = vrot.slane %v899_v59, 4  ;;  %v4545_v59 = vld [vmem:[%s5593_s1 + $0xd8] sm:$0xff]  }
  0x4f   : > { %4015 = vmatpush3.bf16.msra.mxu0 %v4521_v41  ;;  %v875_v7 = vshrl.u32 %v5008_v2, 16  ;;  %v878_v8 = vshll.u32 %v5008_v2, 16  ;;  %v4535_v41 = vld [vmem:[%s5593_s1 + $0xb8] sm:$0xff]   ;;  %v5091_v10 = vcombine.low %v5008_v2, %v5011_v3 }
  0x50   : > { %4111 = vmatpush3.bf16.msra.mxu1 %v4522_v34  ;;  %4016 = vmatprep.subr.bf16.mxu0 %v4523_v50  ;;  %v891_v34 = vor.u32 %v890_v26, %v886_v13  ;;  %v905_v40 = vor.u32 %v904_v46, %v901_v37  ;;  %v1585_v46 = vrot.slane %v5015_v4, 5  ;;  %v4557_v4 = vld [vmem:[%s5593_s1 + $0x240] sm:$0xff]  }
  0x51   : > { %4112 = vmatprep.subr.bf16.mxu1 %v4524_v15  ;;  %v877_v24 = vrot.slane %v875_v7, 4  ;;  %v880_v25 = vrot.slane %v878_v8, 5 }
  0x52   : > { %4009 = vmatmul.mubr.bf16.gmra.mrb[4].mxu0 %v3368_v52  ;;  %v892_v54 = vrot.slane %v891_v34, 4  ;;  %v906_v7 = vrot.slane %v905_v40, 4  ;;  %v1589_v34 = vrot.slane %v5011_v3, 5 }
  0x53   : > { %4017 = vmatpush3.bf16.msra.mxu0 %v4523_v50  ;;  %4105 = vmatmul.mubr.bf16.gmra.mrb[4].mxu1 %v4915_v22  ;;  %v5034_v22 = vld [vmem:[%s4754_s24 + $0x34] sm:$0xf]  ;;  %v881_v45 = vor.u32 %v880_v25, %v877_v24  ;;  %v4536_v50 = vld [vmem:[%s5593_s1 + $0x1b8] sm:$0xff]  }
  0x54   : > { %4113 = vmatpush3.bf16.msra.mxu1 %v4524_v15  ;;  %4018 = vmatprep.subr.bf16.mxu0 %v4525_v9  ;;  %v908_v32 = vshll.u32 %v5034_v22, 16  ;;  %v912_v33 = vshrl.u32 %v5034_v22, 16  ;;  %v918_v15 = vshll.u32 %v5055_v47, 16  ;;  %v5113_v39 = vcombine.low %v5027_v17, %v5034_v22 }
  0x55   : > { %4114 = vmatprep.subr.bf16.mxu1 %v4526_v56  ;;  %4028 = vmatprep.mubr.bf16.mxu0 %v4991_v57  ;;  %v882_v52 = vrot.slane %v881_v45, 4  ;;  %v3514_v45 = vrot.slane %v4971_v16, 9 }
  0x56   : > { %4124 = vmatprep.mubr.bf16.mxu1 %v4997_v61  ;;  %v910_v48 = vrot.slane %v908_v32, 5  ;;  %v914_v49 = vrot.slane %v912_v33, 4  ;;  %v920_v6 = vrot.slane %v918_v15, 5  ;;  %v4548_v32 = vld [vmem:[%s5593_s1 + $0x1e0] sm:$0xff]   ;;  %v4549_v33 = vld [vmem:[%s5593_s1 + $0xe8] sm:$0xff]  }
  0x57   : > { %4019 = vmatpush3.bf16.msra.mxu0 %v4525_v9  ;;  %v863_v9 = vsel %vm4794_vm5, %v858_v36, %v5017_v5  ;;  %v887_v1 = vsel %vm4794_vm5, %v882_v52, %v886_v13  ;;  %v897_v5 = vsel %vm4794_vm5, %v892_v54, %v896_v51  ;;  %v4550_v36 = vld [vmem:[%s5593_s1 + $0x1e8] sm:$0xff]   ;;  %v1596_v51 = vrot.slane %v5034_v22, 5 }
  0x58   : > { %4115 = vmatpush3.bf16.msra.mxu1 %v4526_v56  ;;  %4020 = vmatprep.subr.bf16.mxu0 %v4527_v62  ;;  %v873_v56 = vsel %vm4794_vm5, %v868_v43, %v872_v38  ;;  %v915_v42 = vor.u32 %v914_v49, %v910_v48  ;;  %v5094_v11 = vcombine.low %v887_v1, %v897_v5  ;;  %v4553_v38 = vld [vmem:[%s5593_s1 + $0xf0] sm:$0xff]   ;;  %v1591_v49 = vrot.slane %v1589_v34, 4  ;;  %v4559_v15 = vld [vmem:[%s5593_s1 + $0x248] sm:$0xff]   ;;  %v4564_v1 = vld [vmem:[%s5593_s1 + $0x358] sm:$0xff]  }
  0x59   : > { %4116 = vmatprep.subr.bf16.mxu1 %v4528_v63  ;;  %v911_v23 = vsel %vm4794_vm5, %v906_v7, %v910_v48  ;;  %v4554_v43 = vld [vmem:[%s5593_s1 + $0x1f0] sm:$0xff]   ;;  %v3515_v48 = vrot.slane %v5008_v2, 9  ;;  %v4558_v2 = vld [vmem:[%s5593_s1 + $0x340] sm:$0xff]   ;;  %v3516_v22 = vrot.slane %v5027_v17, 9  ;;  %v1598_v54 = vrot.slane %v1596_v51, 4  ;;  %v4567_v7 = vld [vmem:[%s5593_s1 + $0x268] sm:$0xff]  }
  0x5a   : > { %v916_v8 = vrot.slane %v915_v42, 4  ;;  %v4561_v42 = vld [vmem:[%s5593_s1 + $0x250] sm:$0xff]   ;;  %v4565_v5 = vld [vmem:[%s5593_s1 + $0x260] sm:$0xff]  }
  0x5b   : > { %4021 = vmatpush3.bf16.msra.mxu0 %v4527_v62  ;;  %v1575_v62 = vrot.slane %v4943_v28, 5  ;;  %v4542_v28 = vld [vmem:[%s5593_s1 + $0x1c8] sm:$0xff]   ;;  %v1597_v17 = vsel %vm4778_vm4, %v3516_v22, %v1596_v51 }
  0x5c   : > { %4117 = vmatpush3.bf16.msra.mxu1 %v4528_v63  ;;  %4022 = vmatprep.subr.bf16.mxu0 %v4529_v14  ;;  %v5077_v63 = vcombine.low %v863_v9, %v873_v56  ;;  %v921_v24 = vsel %vm4794_vm5, %v916_v8, %v920_v6  ;;  %v1590_v9 = vsel %vm4778_vm4, %v3515_v48, %v1589_v34  ;;  %v4560_v56 = vld [vmem:[%s5593_s1 + $0x348] sm:$0xff]   ;;  %v4566_v6 = vld [vmem:[%s5593_s1 + $0x360] sm:$0xff]   ;;  %v4587_v34 = vld [vmem:[%s5593_s1 + $0x238] sm:$0xff]  }
  0x5d   : > { %4118 = vmatprep.subr.bf16.mxu1 %v4530_v18  ;;  %v5115_v25 = vcombine.low %v911_v23, %v921_v24  ;;  %v4568_v8 = vld [vmem:[%s5593_s1 + $0x368] sm:$0xff]   ;;  %v4574_v23 = vld [vmem:[%s5593_s1 + $0x300] sm:$0xff]  }
  0x5e   : > { %v4575_v24 = vld [vmem:[%s5593_s1 + $0x208] sm:$0xff]  }
  0x5f   : > { %4023 = vmatpush3.bf16.msra.mxu0 %v4529_v14  ;;  %v3513_v14 = vrot.slane %v4940_v27, 9  ;;  %v4544_v27 = vld [vmem:[%s5593_s1 + $0x1d0] sm:$0xff]  }
  0x60   : > { %4119 = vmatpush3.bf16.msra.mxu1 %v4530_v18  ;;  %4024 = vmatprep.subr.bf16.mxu0 %v4532_v30  ;;  %v1577_v18 = vrot.slane %v1575_v62, 4 }
  0x61   : > { %4120 = vmatprep.subr.bf16.mxu1 %v4533_v31  ;;  %v1576_v13 = vsel %vm4778_vm4, %v3513_v14, %v1575_v62  ;;  %v4570_v14 = vld [vmem:[%s5593_s1 + $0x370] sm:$0xff]  }
  0x62   : > { %v1579_v26 = vsel %vm4778_vm4, %v1577_v18, %v1578_v19  ;;  %v4571_v18 = vld [vmem:[%s5593_s1 + $0x278] sm:$0xff]  }
  0x63   : > { %4025 = vmatpush3.bf16.msra.mxu0 %v4532_v30  ;;  %v5128_v30 = vcombine.low %v1576_v13, %v1579_v26  ;;  %v4572_v19 = vld [vmem:[%s5593_s1 + $0x378] sm:$0xff]   ;;  %v4577_v13 = vld [vmem:[%s5593_s1 + $0x210] sm:$0xff]  }
  0x64   : > { %4121 = vmatpush3.bf16.msra.mxu1 %v4533_v31  ;;  %4026 = vmatprep.subr.bf16.mxu0 %v4535_v41  ;;  %v4547_v31 = vld [vmem:[%s5593_s1 + $0xe0] sm:$0xff]   ;;  %v4578_v26 = vld [vmem:[%s5593_s1 + $0x310] sm:$0xff]  }
  0x65   : > { %4122 = vmatprep.subr.bf16.mxu1 %v4536_v50 }
  0x67   : > { %4027 = vmatpush3.bf16.msra.mxu0 %v4535_v41  ;;  %v1582_v41 = vrot.slane %v4980_v53, 5  ;;  %v4556_v53 = vld [vmem:[%s5593_s1 + $0x1f8] sm:$0xff]  }
  0x68   : > { %4123 = vmatpush3.bf16.msra.mxu1 %v4536_v50  ;;  %4036 = vmatprep.subr.bf16.mxu0 %v4538_v55  ;;  %v1592_v50 = vrot.slane %v5038_v12, 5 }
  0x69   : > { %4132 = vmatprep.subr.bf16.mxu1 %v4539_v58  ;;  %v1584_v37 = vrot.slane %v1582_v41, 4  ;;  %v1583_v16 = vsel %vm4778_vm4, %v3514_v45, %v1582_v41 }
  0x6a   : > { %4029 = vmatmul.mubr.bf16.vlgmr.msra.gmra.mrb[0].mxu0 %v5074_v60  ;;  %v1593_v52 = vsel %vm4778_vm4, %v1591_v49, %v1592_v50  ;;  %v4589_v50 = vld [vmem:[%s5593_s1 + $0x280] sm:$0xff]  }
  0x6b   : > { %4037 = vmatpush3.bf16.msra.mxu0 %v4538_v55  ;;  %4125 = vmatmul.mubr.bf16.vlgmr.msra.gmra.mrb[0].mxu1 %v5077_v63  ;;  %v1586_v3 = vsel %vm4778_vm4, %v1584_v37, %v1585_v46  ;;  %v1599_v55 = vrot.slane %v5055_v47, 5  ;;  %v5189_v40 = vcombine.low %v1590_v9, %v1593_v52  ;;  %v4588_v37 = vld [vmem:[%s5593_s1 + $0x338] sm:$0xff]  }
  0x6c   : > { %4133 = vmatpush3.bf16.msra.mxu1 %v4539_v58  ;;  %4038 = vmatprep.subr.bf16.mxu0 %v4541_v0  ;;  %v5174_v12 = vcombine.low %v1583_v16, %v1586_v3  ;;  %v4562_v58 = vld [vmem:[%s5593_s1 + $0x350] sm:$0xff]   ;;  %v5310_v16 = vld [vmem:[%s4754_s24 + $0x20] sm:$0x1] }
  0x6d   : > { %4134 = vmatprep.subr.bf16.mxu1 %v4542_v28  ;;  %4032 = vmatprep.mubr.bf16.mxu0 %v5091_v10  ;;  %v1600_v47 = vsel %vm4778_vm4, %v1598_v54, %v1599_v55  ;;  %v4590_v3 = vld [vmem:[%s5593_s1 + $0x380] sm:$0xff]   ;;  %v4593_v54 = vld [vmem:[%s5593_s1 + $0x290] sm:$0xff]  }
  0x6e   : > { %4128 = vmatprep.mubr.bf16.mxu1 %v5094_v11  ;;  %v5204_v62 = vcombine.low %v1597_v17, %v1600_v47  ;;  %v4594_v55 = vld [vmem:[%s5593_s1 + $0x390] sm:$0xff]  }
  0x6f   : > { %4039 = vmatpush3.bf16.msra.mxu0 %v4541_v0  ;;  %v4563_v0 = vld [vmem:[%s5593_s1 + $0x258] sm:$0xff]  }
  0x70   : > { %4135 = vmatpush3.bf16.msra.mxu1 %v4542_v28  ;;  %4040 = vmatprep.subr.bf16.mxu0 %v4543_v20  ;;  %v4569_v28 = vld [vmem:[%s5593_s1 + $0x270] sm:$0xff]  }
  0x71   : > { %4136 = vmatprep.subr.bf16.mxu1 %v4544_v27 }
  0x72   : > { %4033 = vmatmul.mubr.bf16.gmra.mrb[4].mxu0 %v5113_v39 }
  0x73   : > { %4041 = vmatpush3.bf16.msra.mxu0 %v4543_v20  ;;  %4129 = vmatmul.mubr.bf16.gmra.mrb[4].mxu1 %v5115_v25  ;;  %v4573_v20 = vld [vmem:[%s5593_s1 + $0x200] sm:$0xff]  }
  0x74   : > { %4137 = vmatpush3.bf16.msra.mxu1 %v4544_v27  ;;  %4042 = vmatprep.subr.bf16.mxu0 %v4545_v59  ;;  %v4576_v27 = vld [vmem:[%s5593_s1 + $0x308] sm:$0xff]  }
  0x75   : > { %4138 = vmatprep.subr.bf16.mxu1 %v4546_v29  ;;  %4052 = vmatprep.mubr.bf16.mxu0 %v4997_v61 }
  0x76   : > { %4148 = vmatprep.mubr.bf16.mxu1 %v5128_v30 }
  0x77   : > { %4043 = vmatpush3.bf16.msra.mxu0 %v4545_v59  ;;  %v4579_v59 = vld [vmem:[%s5593_s1 + $0x218] sm:$0xff]  }
  0x78   : > { %4139 = vmatpush3.bf16.msra.mxu1 %v4546_v29  ;;  %4044 = vmatprep.subr.bf16.mxu0 %v4547_v31  ;;  %v4580_v29 = vld [vmem:[%s5593_s1 + $0x318] sm:$0xff]  }
  0x79   : > { %4140 = vmatprep.subr.bf16.mxu1 %v4548_v32 }
  0x7b   : > { %4045 = vmatpush3.bf16.msra.mxu0 %v4547_v31  ;;  %v4582_v31 = vld [vmem:[%s5593_s1 + $0x320] sm:$0xff]  }
  0x7c   : > { %4141 = vmatpush3.bf16.msra.mxu1 %v4548_v32  ;;  %4046 = vmatprep.subr.bf16.mxu0 %v4549_v33  ;;  %v4583_v32 = vld [vmem:[%s5593_s1 + $0x228] sm:$0xff]  }
  0x7d   : > { %4142 = vmatprep.subr.bf16.mxu1 %v4550_v36 }
  0x7f   : > { %4047 = vmatpush3.bf16.msra.mxu0 %v4549_v33  ;;  %v4584_v33 = vld [vmem:[%s5593_s1 + $0x328] sm:$0xff]  }
  0x80   : > { %4143 = vmatpush3.bf16.msra.mxu1 %v4550_v36  ;;  %4048 = vmatprep.subr.bf16.mxu0 %v4553_v38  ;;  %v5291_v36 = vld [vmem:[%s4754_s24 + $0x1c] sm:$0xf] }
  0x81   : > { %4144 = vmatprep.subr.bf16.mxu1 %v4554_v43  ;;  %v2231_v45 = vshll.u32 %v5291_v36, 16 }
  0x83   : > { %4049 = vmatpush3.bf16.msra.mxu0 %v4553_v38  ;;  %v4586_v38 = vld [vmem:[%s5593_s1 + $0x330] sm:$0xff]   ;;  %v2233_v48 = vrot.slane %v2231_v45, 5 }
  0x84   : > { %4145 = vmatpush3.bf16.msra.mxu1 %v4554_v43  ;;  %4050 = vmatprep.subr.bf16.mxu0 %v4555_v44 }
  0x85   : > { %4146 = vmatprep.subr.bf16.mxu1 %v4556_v53 }
  0x87   : > { %4051 = vmatpush3.bf16.msra.mxu0 %v4555_v44  ;;  %v2235_v44 = vshrl.u32 %v5291_v36, 16 }
  0x88   : > { %4147 = vmatpush3.bf16.msra.mxu1 %v4556_v53  ;;  %4156 = vmatprep.subr.bf16.mxu0 %v4557_v4 }
  0x89   : > { %4252 = vmatprep.subr.bf16.mxu1 %v4558_v2  ;;  %v2237_v49 = vrot.slane %v2235_v44, 4 }
  0x8a   : > { %4053 = vmatmul.mubr.bf16.vlgmr.msra.gmra.mrb[0].mxu0 %v5077_v63 }
  0x8b   : > { %4149 = vmatmul.mubr.bf16.vlgmr.msra.gmra.mrb[0].mxu1 %v5174_v12  ;;  %4157 = vmatpush3.bf16.msra.mxu0 %v4557_v4  ;;  %v2238_v51 = vor.u32 %v2237_v49, %v2233_v48 }
  0x8c   : > { %4253 = vmatpush3.bf16.msra.mxu1 %v4558_v2  ;;  %4158 = vmatprep.subr.bf16.mxu0 %v4559_v15  ;;  %v2241_v2 = vshll.u32 %v5310_v16, 16 }
  0x8d   : > { %4254 = vmatprep.subr.bf16.mxu1 %v4560_v56  ;;  %4056 = vmatprep.mubr.bf16.mxu0 %v5094_v11  ;;  %v2239_v52 = vrot.slane %v2238_v51, 4 }
  0x8e   : > { %4152 = vmatprep.mubr.bf16.mxu1 %v5189_v40  ;;  %v2243_v22 = vrot.slane %v2241_v2, 5 }
  0x8f   : > { %4159 = vmatpush3.bf16.msra.mxu0 %v4559_v15  ;;  %v4592_v15 = vld [vmem:[%s5593_s1 + $0x388] sm:$0xff]  }
  0x90   : > { %4255 = vmatpush3.bf16.msra.mxu1 %v4560_v56  ;;  %4160 = vmatprep.subr.bf16.mxu0 %v4561_v42  ;;  %v2244_v56 = vsel %vm4794_vm5, %v2239_v52, %v2243_v22  ;;  %v5415_v52 = vld [vmem:[%s4754_s24 + $0x44] sm:$0x1] }
  0x91   : > { %4256 = vmatprep.subr.bf16.mxu1 %v4562_v58 }
  0x92   : > { %4057 = vmatmul.mubr.bf16.gmra.mrb[4].mxu0 %v5115_v25 }
  0x93   : > { %4153 = vmatmul.mubr.bf16.gmra.mrb[4].mxu1 %v5204_v62  ;;  %4161 = vmatpush3.bf16.msra.mxu0 %v4561_v42 }
  0x94   : > { %4257 = vmatpush3.bf16.msra.mxu1 %v4562_v58  ;;  %4162 = vmatprep.subr.bf16.mxu0 %v4563_v0 }
  0x95   : > { %4258 = vmatprep.subr.bf16.mxu1 %v4564_v1  ;;  %4172 = vmatprep.mubr.bf16.mxu0 %v4997_v61 }
  0x96   : > { %4268 = vmatprep.mubr.bf16.mxu1 %v5128_v30  ;;  %v4581_v30 = vld [vmem:[%s5593_s1 + $0x220] sm:$0xff]  }
  0x97   : > { %4163 = vmatpush3.bf16.msra.mxu0 %v4563_v0 }
  0x98   : > { %4259 = vmatpush3.bf16.msra.mxu1 %v4564_v1  ;;  %4164 = vmatprep.subr.bf16.mxu0 %v4565_v5  ;;  %v4597_v1 = vld [vmem:[%s5593_s1 + $0x2a0] sm:$0xff]  }
  0x99   : > { %4260 = vmatprep.subr.bf16.mxu1 %v4566_v6 }
  0x9b   : > { %4165 = vmatpush3.bf16.msra.mxu0 %v4565_v5  ;;  %v5362_v5 = vld [vmem:[%s4754_s24 + $0x30] sm:$0xf] }
  0x9c   : > { %4261 = vmatpush3.bf16.msra.mxu1 %v4566_v6  ;;  %4166 = vmatprep.subr.bf16.mxu0 %v4567_v7  ;;  %v4598_v6 = vld [vmem:[%s5593_s1 + $0x3a0] sm:$0xff]  }
  0x9d   : > { %4262 = vmatprep.subr.bf16.mxu1 %v4568_v8 }
  0x9f   : > { %4167 = vmatpush3.bf16.msra.mxu0 %v4567_v7 }
  0xa0   : > { %4263 = vmatpush3.bf16.msra.mxu1 %v4568_v8  ;;  %4168 = vmatprep.subr.bf16.mxu0 %v4569_v28 }
  0xa1   : > { %4264 = vmatprep.subr.bf16.mxu1 %v4570_v14 }
  0xa3   : > { %4169 = vmatpush3.bf16.msra.mxu0 %v4569_v28 }
  0xa4   : > { %4265 = vmatpush3.bf16.msra.mxu1 %v4570_v14  ;;  %4170 = vmatprep.subr.bf16.mxu0 %v4571_v18  ;;  %v5374_v14 = vld [vmem:[%s4754_s24 + $0x2c] sm:$0x1] }
  0xa5   : > { %4266 = vmatprep.subr.bf16.mxu1 %v4572_v19 }
  0xa7   : > { %4171 = vmatpush3.bf16.msra.mxu0 %v4571_v18  ;;  %v2270_v18 = vshrl.u32 %v5362_v5, 16 }
  0xa8   : > { %4267 = vmatpush3.bf16.msra.mxu1 %v4572_v19  ;;  %4180 = vmatprep.subr.bf16.mxu0 %v4573_v20  ;;  %v2273_v19 = vshll.u32 %v5362_v5, 16 }
  0xa9   : > { %4276 = vmatprep.subr.bf16.mxu1 %v4574_v23 }
  0xaa   : > { %4173 = vmatmul.mubr.bf16.vlgmr.msra.gmra.mrb[8].mxu0 %v5077_v63 }
  0xab   : > { %4181 = vmatpush3.bf16.msra.mxu0 %v4573_v20  ;;  %4269 = vmatmul.mubr.bf16.vlgmr.msra.gmra.mrb[8].mxu1 %v5174_v12  ;;  %v4591_v12 = vld [vmem:[%s5593_s1 + $0x288] sm:$0xff]  }
  0xac   : > { %4277 = vmatpush3.bf16.msra.mxu1 %v4574_v23  ;;  %4182 = vmatprep.subr.bf16.mxu0 %v4575_v24 }
  0xad   : > { %4278 = vmatprep.subr.bf16.mxu1 %v4576_v27  ;;  %4176 = vmatprep.mubr.bf16.mxu0 %v5094_v11 }
  0xae   : > { %4272 = vmatprep.mubr.bf16.mxu1 %v5189_v40  ;;  %v5340_v40 = vld [vmem:[%s4754_s24 + $0x28] sm:$0xf] }
  0xaf   : > { %4183 = vmatpush3.bf16.msra.mxu0 %v4575_v24  ;;  %v2255_v0 = vshll.u32 %v5340_v40, 16  ;;  %v4599_v24 = vld [vmem:[%s5593_s1 + $0x2a8] sm:$0xff]  }
  0xb0   : > { %4279 = vmatpush3.bf16.msra.mxu1 %v4576_v27  ;;  %4184 = vmatprep.subr.bf16.mxu0 %v4577_v13  ;;  %v4600_v27 = vld [vmem:[%s5593_s1 + $0x3a8] sm:$0xff]  }
  0xb1   : > { %4280 = vmatprep.subr.bf16.mxu1 %v4578_v26  ;;  %v5371_v8 = vrot.slane %v2255_v0, 5 }
  0xb2   : > { %4177 = vmatmul.mubr.bf16.gmra.mrb[12].mxu0 %v5115_v25 }
  0xb3   : > { %4185 = vmatpush3.bf16.msra.mxu0 %v4577_v13  ;;  %4273 = vmatmul.mubr.bf16.gmra.mrb[12].mxu1 %v5204_v62  ;;  %v2259_v62 = vshrl.u32 %v5340_v40, 16  ;;  %v5387_v13 = vld [vmem:[%s4754_s24 + $0x3c] sm:$0xf] }
  0xb4   : > { %4281 = vmatpush3.bf16.msra.mxu1 %v4578_v26  ;;  %4186 = vmatprep.subr.bf16.mxu0 %v4579_v59  ;;  %v5390_v26 = vld [vmem:[%s4754_s24 + $0x40] sm:$0xf]  ;;  %v2297_v44 = vshll.u32 %v5387_v13, 16 }
  0xb5   : > { %4282 = vmatprep.subr.bf16.mxu1 %v4580_v29  ;;  %4196 = vmatprep.mubr.bf16.mxu0 %v4991_v57  ;;  %v4585_v57 = vld [vmem:[%s5593_s1 + $0x230] sm:$0xff]   ;;  %v2261_v28 = vrot.slane %v2259_v62, 4  ;;  %v2307_v45 = vshrl.u32 %v5390_v26, 16 }
  0xb6   : > { %4292 = vmatprep.mubr.bf16.mxu1 %v4997_v61  ;;  %v5288_v61 = vld [vmem:[%s4754_s24 + $0x18] sm:$0xf]  ;;  %v2299_v2 = vrot.slane %v2297_v44, 5  ;;  %v4616_v44 = vld [vmem:[%s5593_s1 + $0x3e0] sm:$0xff]  }
  0xb7   : > { %4187 = vmatpush3.bf16.msra.mxu0 %v4579_v59  ;;  %v2222_v41 = vshrl.u32 %v5288_v61, 16  ;;  %v2225_v43 = vshll.u32 %v5288_v61, 16  ;;  %v3609_v17 = vcombine.low %v5288_v61, %v5291_v36 }
  0xb8   : > { %4283 = vmatpush3.bf16.msra.mxu1 %v4580_v29  ;;  %4188 = vmatprep.subr.bf16.mxu0 %v4581_v30  ;;  %v2262_v29 = vor.u32 %v2261_v28, %v5371_v8 }
  0xb9   : > { %4284 = vmatprep.subr.bf16.mxu1 %v4582_v31  ;;  %v2224_v46 = vrot.slane %v2222_v41, 4  ;;  %v2227_v53 = vrot.slane %v2225_v43, 5  ;;  %v5398_v41 = vld [vmem:[%s4754_s24 + $0x38] sm:$0x1]  ;;  %v2294_v43 = vshrl.u32 %v5387_v13, 16 }
  0xbb   : > { %4189 = vmatpush3.bf16.msra.mxu0 %v4581_v30  ;;  %v2228_v4 = vor.u32 %v2227_v53, %v2224_v46  ;;  %v2265_v30 = vshll.u32 %v5374_v14, 16  ;;  %v2296_v51 = vrot.slane %v2294_v43, 4  ;;  %v4615_v43 = vld [vmem:[%s5593_s1 + $0x2e0] sm:$0xff]  }
  0xbc   : > { %4285 = vmatpush3.bf16.msra.mxu1 %v4582_v31  ;;  %4190 = vmatprep.subr.bf16.mxu0 %v4583_v32  ;;  %v4601_v31 = vld [vmem:[%s5593_s1 + $0x2b0] sm:$0xff]  }
  0xbd   : > { %4286 = vmatprep.subr.bf16.mxu1 %v4584_v33  ;;  %v2229_v9 = vrot.slane %v2228_v4, 4  ;;  %v2267_v53 = vrot.slane %v2265_v30, 5  ;;  %v4603_v4 = vld [vmem:[%s5593_s1 + $0x2b8] sm:$0xff]  }
  0xbf   : > { %4191 = vmatpush3.bf16.msra.mxu0 %v4583_v32  ;;  %v2272_v32 = vrot.slane %v2270_v18, 4 }
  0xc0   : > { %4287 = vmatpush3.bf16.msra.mxu1 %v4584_v33  ;;  %4192 = vmatprep.subr.bf16.mxu0 %v4585_v57  ;;  %v2275_v33 = vrot.slane %v2273_v19, 5  ;;  %v4610_v19 = vld [vmem:[%s5593_s1 + $0x3c8] sm:$0xff]  }
  0xc1   : > { %4288 = vmatprep.subr.bf16.mxu1 %v4586_v38 }
  0xc2   : > { %v2276_v49 = vor.u32 %v2275_v33, %v2272_v32  ;;  %v4613_v33 = vld [vmem:[%s5593_s1 + $0x2d8] sm:$0xff]  }
  0xc3   : > { %4193 = vmatpush3.bf16.msra.mxu0 %v4585_v57 }
  0xc4   : > { %4289 = vmatpush3.bf16.msra.mxu1 %v4586_v38  ;;  %4194 = vmatprep.subr.bf16.mxu0 %v4587_v34 }
  0xc5   : > { %4290 = vmatprep.subr.bf16.mxu1 %v4588_v37 }
  0xc7   : > { %4195 = vmatpush3.bf16.msra.mxu0 %v4587_v34  ;;  %v2303_v34 = vshll.u32 %v5390_v26, 16 }
  0xc8   : > { %4291 = vmatpush3.bf16.msra.mxu1 %v4588_v37  ;;  %4204 = vmatprep.subr.bf16.mxu0 %v4589_v50  ;;  %v4602_v37 = vld [vmem:[%s5593_s1 + $0x3b0] sm:$0xff]  }
  0xc9   : > { %4300 = vmatprep.subr.bf16.mxu1 %v4590_v3 }
  0xca   : > { %4197 = vmatmul.mubr.bf16.vlgmr.msra.gmra.mrb[8].mxu0 %v5074_v60  ;;  %v5333_v60 = vld [vmem:[%s4754_s24 + $0x24] sm:$0xf] }
  0xcb   : > { %4205 = vmatpush3.bf16.msra.mxu0 %v4589_v50  ;;  %4293 = vmatmul.mubr.bf16.vlgmr.msra.gmra.mrb[8].mxu1 %v5077_v63  ;;  %v2234_v63 = vsel %vm4794_vm5, %v2229_v9, %v2233_v48  ;;  %v2246_v47 = vshrl.u32 %v5333_v60, 16  ;;  %v2249_v58 = vshll.u32 %v5333_v60, 16  ;;  %v2263_v48 = vrot.slane %v2262_v29, 4  ;;  %v4604_v9 = vld [vmem:[%s5593_s1 + $0x3b8] sm:$0xff]  }
  0xcc   : > { %4301 = vmatpush3.bf16.msra.mxu1 %v4590_v3  ;;  %4206 = vmatprep.subr.bf16.mxu0 %v4591_v12  ;;  %v5352_v42 = vcombine.low %v2234_v63, %v2244_v56  ;;  %v2289_v3 = vshll.u32 %v5398_v41, 16  ;;  %v4606_v56 = vld [vmem:[%s5593_s1 + $0x2c0] sm:$0xff]   ;;  %v3610_v62 = vcombine.low %v5333_v60, %v5340_v40 }
  0xcd   : > { %4302 = vmatprep.subr.bf16.mxu1 %v4592_v15  ;;  %4200 = vmatprep.mubr.bf16.mxu0 %v5091_v10  ;;  %v4595_v10 = vld [vmem:[%s5593_s1 + $0x298] sm:$0xff]   ;;  %v2251_v7 = vrot.slane %v2249_v58, 5  ;;  %v4607_v58 = vld [vmem:[%s5593_s1 + $0x3c0] sm:$0xff]  }
  0xce   : > { %4296 = vmatprep.mubr.bf16.mxu1 %v5094_v11  ;;  %v4596_v11 = vld [vmem:[%s5593_s1 + $0x398] sm:$0xff]   ;;  %v2291_v63 = vrot.slane %v2289_v3, 5  ;;  %v2930_v3 = vrot.slane %v5374_v14, 5  ;;  %v2941_v14 = vrot.slane %v5390_v26, 5 }
  0xcf   : > { %4207 = vmatpush3.bf16.msra.mxu0 %v4591_v12  ;;  %v2305_v12 = vrot.slane %v2303_v34, 5  ;;  %v4618_v34 = vld [vmem:[%s5593_s1 + $0x3e8] sm:$0xff]  }
  0xd0   : > { %4303 = vmatpush3.bf16.msra.mxu1 %v4592_v15  ;;  %4208 = vmatprep.subr.bf16.mxu0 %v4593_v54  ;;  %v2309_v15 = vrot.slane %v2307_v45, 4  ;;  %v4617_v45 = vld [vmem:[%s5593_s1 + $0x2e8] sm:$0xff]  }
  0xd1   : > { %4304 = vmatprep.subr.bf16.mxu1 %v4594_v55 }
  0xd2   : > { %4201 = vmatmul.mubr.bf16.gmra.mrb[12].mxu0 %v5113_v39  ;;  %v5365_v39 = vld [vmem:[%s4754_s24 + $0x34] sm:$0xf]  ;;  %s3305_s24 = sshll.u32 %s214_s20, 1 }
  0xd3   : > { %4209 = vmatpush3.bf16.msra.mxu0 %v4593_v54  ;;  %4297 = vmatmul.mubr.bf16.gmra.mrb[12].mxu1 %v5115_v25  ;;  %v2248_v25 = vrot.slane %v2246_v47, 4  ;;  %v2283_v20 = vshrl.u32 %v5365_v39, 16  ;;  %v2279_v23 = vshll.u32 %v5365_v39, 16  ;;  %v2277_v54 = vrot.slane %v2276_v49, 4  ;;  %s216_s22 = scalar_lea.vmem %s5595_s3, %s3305_s24 }
  0xd4   : > { %4305 = vmatpush3.bf16.msra.mxu1 %v4594_v55  ;;  %4210 = vmatprep.subr.bf16.mxu0 %v4595_v10  ;;  %v2313_v47 = vshll.u32 %v5415_v52, 16  ;;  %v3730_v49 = vrot.slane %v5333_v60, 9 }
  0xd5   : > { %4306 = vmatprep.subr.bf16.mxu1 %v4596_v11  ;;  %4220 = vmatprep.mubr.bf16.mxu0 %v3609_v17  ;;  %v2252_v59 = vor.u32 %v2251_v7, %v2248_v25  ;;  %v2281_v57 = vrot.slane %v2279_v23, 5  ;;  %v2285_v38 = vrot.slane %v2283_v20, 4  ;;  %v2310_v17 = vor.u32 %v2309_v15, %v2305_v12  ;;  %v4609_v7 = vld [vmem:[%s5593_s1 + $0x2c8] sm:$0xff]  }
  0xd6   : > { %4316 = vmatprep.mubr.bf16.mxu1 %v5352_v42  ;;  %v2920_v25 = vrot.slane %v5291_v36, 5  ;;  %v2315_v18 = vrot.slane %v2313_v47, 5  ;;  %v3611_v20 = vcombine.low %v5362_v5, %v5365_v39  ;;  %v3729_v36 = vrot.slane %v5288_v61, 9  ;;  %v4612_v61 = vld [vmem:[%s5593_s1 + $0x3d0] sm:$0xff]  }
  0xd7   : > { %4211 = vmatpush3.bf16.msra.mxu0 %v4595_v10  ;;  %v2253_v46 = vrot.slane %v2252_v59, 4  ;;  %v2286_v50 = vor.u32 %v2285_v38, %v2281_v57  ;;  %v2268_v10 = vsel %vm4794_vm5, %v2263_v48, %v2267_v53  ;;  %v2311_v28 = vrot.slane %v2310_v17, 4  ;;  %v4611_v59 = vld [vmem:[%s5593_s1 + $0x2d0] sm:$0xff]   ;;  %v4623_v48 = vld [vmem:[%s5593_s1 + $0x2f8] sm:$0xff]  }
  0xd8   : > { %4307 = vmatpush3.bf16.msra.mxu1 %v4596_v11  ;;  %4212 = vmatprep.subr.bf16.mxu0 %v4597_v1  ;;  %v2300_v11 = vor.u32 %v2299_v2, %v2296_v51  ;;  %v2921_v32 = vsel %vm4778_vm4, %v3729_v36, %v2920_v25  ;;  %v2934_v53 = vrot.slane %v5365_v39, 5  ;;  %v2937_v51 = vrot.slane %v5398_v41, 5 }
  0xd9   : > { %4308 = vmatprep.subr.bf16.mxu1 %v4598_v6  ;;  %v2258_v22 = vsel %vm4794_vm5, %v2253_v46, %v5371_v8  ;;  %v2287_v55 = vrot.slane %v2286_v50, 4  ;;  %v2316_v30 = vsel %vm4794_vm5, %v2311_v28, %v2315_v18  ;;  %v4622_v46 = vld [vmem:[%s5593_s1 + $0x3f0] sm:$0xff]  }
  0xda   : > { %v5431_v0 = vcombine.low %v2258_v22, %v2268_v10  ;;  %v2301_v8 = vrot.slane %v2300_v11, 4  ;;  %v2936_v39 = vrot.slane %v2934_v53, 4  ;;  %v2943_v22 = vrot.slane %v2941_v14, 4 }
  0xdb   : > { %4213 = vmatpush3.bf16.msra.mxu0 %v4597_v1  ;;  %v2282_v1 = vsel %vm4794_vm5, %v2277_v54, %v2281_v57  ;;  %v4614_v57 = vld [vmem:[%s5593_s1 + $0x3d8] sm:$0xff]   ;;  %v2944_v54 = vrot.slane %v5415_v52, 5 }
  0xdc   : > { %4309 = vmatpush3.bf16.msra.mxu1 %v4598_v6  ;;  %4214 = vmatprep.subr.bf16.mxu0 %v4599_v24  ;;  %v2292_v6 = vsel %vm4794_vm5, %v2287_v55, %v2291_v63  ;;  %v2306_v29 = vsel %vm4794_vm5, %v2301_v8, %v2305_v12 }
  0xdd   : > { %4310 = vmatprep.subr.bf16.mxu1 %v4600_v27  ;;  %v5446_v23 = vcombine.low %v2282_v1, %v2292_v6  ;;  %v2945_v55 = vsel %vm4778_vm4, %v2943_v22, %v2944_v54 }
  0xdf   : > { %4215 = vmatpush3.bf16.msra.mxu0 %v4599_v24  ;;  %v2922_v24 = vrot.slane %v2920_v25, 4 }
  0xe0   : > { %4311 = vmatpush3.bf16.msra.mxu1 %v4600_v27  ;;  %4216 = vmatprep.subr.bf16.mxu0 %v4601_v31  ;;  %v2923_v27 = vrot.slane %v5310_v16, 5  ;;  %v3612_v16 = vcombine.low %v5387_v13, %v5390_v26 }
  0xe1   : > { %4312 = vmatprep.subr.bf16.mxu1 %v4602_v37 }
  0xe2   : > { %v2924_v35 = vsel %vm4778_vm4, %v2922_v24, %v2923_v27 }
  0xe3   : > { %4217 = vmatpush3.bf16.msra.mxu0 %v4601_v31  ;;  %v5464_v31 = vcombine.low %v2306_v29, %v2316_v30  ;;  %v3749_v38 = vcombine.low %v2921_v32, %v2924_v35 }
  0xe4   : > { %4313 = vmatpush3.bf16.msra.mxu1 %v4602_v37  ;;  %4218 = vmatprep.subr.bf16.mxu0 %v4603_v4  ;;  %v2927_v37 = vrot.slane %v5340_v40, 5  ;;  %v4624_v40 = vld [vmem:[%s5593_s1 + $0x3f8] sm:$0xff]  }
  0xe5   : > { %4314 = vmatprep.subr.bf16.mxu1 %v4604_v9 }
  0xe6   : > { %v2929_v50 = vrot.slane %v2927_v37, 4  ;;  %v2928_v2 = vsel %vm4778_vm4, %v3730_v49, %v2927_v37 }
  0xe7   : > { %4219 = vmatpush3.bf16.msra.mxu0 %v4603_v4  ;;  %v3731_v4 = vrot.slane %v5362_v5, 9  ;;  %v2938_v5 = vsel %vm4778_vm4, %v2936_v39, %v2937_v51 }
  0xe8   : > { %4315 = vmatpush3.bf16.msra.mxu1 %v4604_v9  ;;  %4228 = vmatprep.subr.bf16.mxu0 %v4606_v56  ;;  %v2931_v60 = vsel %vm4778_vm4, %v2929_v50, %v2930_v3  ;;  %v3732_v9 = vrot.slane %v5387_v13, 9 }
  0xe9   : > { %4324 = vmatprep.subr.bf16.mxu1 %v4607_v58  ;;  %v2935_v12 = vsel %vm4778_vm4, %v3731_v4, %v2934_v53  ;;  %v3750_v41 = vcombine.low %v2928_v2, %v2931_v60 }
  0xea   : > { %4221 = vmatmul.mubr.bf16.vlgmr.msra.gmra.mrb[8].mxu0 %v3610_v62  ;;  %v3751_v15 = vcombine.low %v2935_v12, %v2938_v5  ;;  %v2942_v26 = vsel %vm4778_vm4, %v3732_v9, %v2941_v14 }
  0xeb   : > { %4229 = vmatpush3.bf16.msra.mxu0 %v4606_v56  ;;  %4317 = vmatmul.mubr.bf16.vlgmr.msra.gmra.mrb[8].mxu1 %v5431_v0  ;;  %v3752_v63 = vcombine.low %v2942_v26, %v2945_v55 }
  0xec   : > { %4325 = vmatpush3.bf16.msra.mxu1 %v4607_v58  ;;  %4230 = vmatprep.subr.bf16.mxu0 %v4609_v7 }
  0xed   : > { %4326 = vmatprep.subr.bf16.mxu1 %v4610_v19  ;;  %4224 = vmatprep.mubr.bf16.mxu0 %v3611_v20 }
  0xee   : > { %4320 = vmatprep.mubr.bf16.mxu1 %v5446_v23 }
  0xef   : > { %4231 = vmatpush3.bf16.msra.mxu0 %v4609_v7 }
  0xf0   : > { %4327 = vmatpush3.bf16.msra.mxu1 %v4610_v19  ;;  %4232 = vmatprep.subr.bf16.mxu0 %v4611_v59 }
  0xf1   : > { %4328 = vmatprep.subr.bf16.mxu1 %v4612_v61 }
  0xf2   : > { %4225 = vmatmul.mubr.bf16.gmra.mrb[12].mxu0 %v3612_v16 }
  0xf3   : > { %4233 = vmatpush3.bf16.msra.mxu0 %v4611_v59  ;;  %4321 = vmatmul.mubr.bf16.gmra.mrb[12].mxu1 %v5464_v31 }
  0xf4   : > { %4329 = vmatpush3.bf16.msra.mxu1 %v4612_v61  ;;  %4234 = vmatprep.subr.bf16.mxu0 %v4613_v33 }
  0xf5   : > { %4330 = vmatprep.subr.bf16.mxu1 %v4614_v57  ;;  %4244 = vmatprep.mubr.bf16.mxu0 %v5352_v42  ;;  %v4621_v42 = vld [vmem:[%s5593_s1 + $0x2f0] sm:$0xff]  }
  0xf6   : > { %4340 = vmatprep.mubr.bf16.mxu1 %v3749_v38 }
  0xf7   : > { %4235 = vmatpush3.bf16.msra.mxu0 %v4613_v33 }
  0xf8   : > { %4331 = vmatpush3.bf16.msra.mxu1 %v4614_v57  ;;  %4236 = vmatprep.subr.bf16.mxu0 %v4615_v43 }
  0xf9   : > { %4332 = vmatprep.subr.bf16.mxu1 %v4616_v44 }
  0xfb   : > { %4237 = vmatpush3.bf16.msra.mxu0 %v4615_v43 }
  0xfc   : > { %4333 = vmatpush3.bf16.msra.mxu1 %v4616_v44  ;;  %4238 = vmatprep.subr.bf16.mxu0 %v4617_v45 }
  0xfd   : > { %4334 = vmatprep.subr.bf16.mxu1 %v4618_v34 }
  0xff   : > { %4239 = vmatpush3.bf16.msra.mxu0 %v4617_v45 }
 0x100   : > { %4335 = vmatpush3.bf16.msra.mxu1 %v4618_v34  ;;  %4240 = vmatprep.subr.bf16.mxu0 %v4621_v42 }
 0x101   : > { %4336 = vmatprep.subr.bf16.mxu1 %v4622_v46 }
 0x103   : > { %4241 = vmatpush3.bf16.msra.mxu0 %v4621_v42 }
 0x104   : > { %4337 = vmatpush3.bf16.msra.mxu1 %v4622_v46  ;;  %4242 = vmatprep.subr.bf16.mxu0 %v4623_v48 }
 0x105   : > { %4338 = vmatprep.subr.bf16.mxu1 %v4624_v40 }
 0x107   : > { %4243 = vmatpush3.bf16.msra.mxu0 %v4623_v48 }
 0x108   : > { %4339 = vmatpush3.bf16.msra.mxu1 %v4624_v40 }
 0x10a   : > { %4245 = vmatmul.mubr.bf16.vlgmr.msra.gmra.mrb[8].mxu0 %v5431_v0 }
 0x10b   : > { %4341 = vmatmul.mubr.bf16.vlgmr.msra.gmra.mrb[8].mxu1 %v3750_v41  ;;  %4248 = vmatprep.mubr.bf16.mxu0 %v5446_v23 }
 0x10c   : > { %4344 = vmatprep.mubr.bf16.mxu1 %v3751_v15 }
 0x112   : > { %4249 = vmatmul.mubr.bf16.gmra.mrb[12].mxu0 %v5464_v31 }
 0x113   : > { %4345 = vmatmul.mubr.bf16.gmra.mrb[12].mxu1 %v3752_v63 }
 0x15d   : > { %v4054_v21 = vpop.f32.mrb[0].mxu0 }
 0x15e   : > { %1114 = vst [vmem:[%s5531_s11 + $0x40] sm:$0xff] %v4054_v21  ;;  %v4150_v13 = vpop.f32.mrb[0].mxu1  ;;  %v1037_v52 = vpop.f32.mrb[1].mxu0  ;;  %v1092_v7 = vmul.f32 %v4054_v21, %v4054_v21 }
 0x15f   : > { %1793 = vst [vmem:[%s5531_s11 + $0x48] sm:$0xff] %v4150_v13  ;;  %1112 = vst [vmem:[%s5531_s11] sm:$0xff] %v1037_v52  ;;  %v1716_v56 = vpop.f32.mrb[1].mxu1  ;;  %v4055_v10 = vpop.f32.mrb[2].mxu0  ;;  %v1090_v47 = vmul.f32 %v1037_v52, %v1037_v52  ;;  %v1771_v18 = vmul.f32 %v4150_v13, %v4150_v13 }
 0x160   : > { %1791 = vst [vmem:[%s5531_s11 + $0x8] sm:$0xff] %v1716_v56  ;;  %1115 = vst [vmem:[%s5531_s11 + $0x50] sm:$0xff] %v4055_v10  ;;  %v4151_v11 = vpop.f32.mrb[2].mxu1  ;;  %v1040_v17 = vpop.f32.mrb[3].mxu0  ;;  %v1769_v1 = vmul.f32 %v1716_v56, %v1716_v56  ;;  %v1093_v23 = vmul.f32 %v4055_v10, %v4055_v10 }
 0x161   : > { %1794 = vst [vmem:[%s5531_s11 + $0x58] sm:$0xff] %v4151_v11  ;;  %v1076_v58 = vadd.f32 %v1040_v17, %v1037_v52  ;;  %v1091_v62 = vmul.f32 %v1040_v17, %v1040_v17  ;;  %1113 = vst [vmem:[%s5531_s11 + $0x10] sm:$0xff] %v1040_v17  ;;  %v1719_v0 = vpop.f32.mrb[3].mxu1  ;;  %v1772_v59 = vmul.f32 %v4151_v11, %v4151_v11 }
 0x162   : > { %v1755_v6 = vadd.f32 %v1719_v0, %v1716_v56  ;;  %v1770_v25 = vmul.f32 %v1719_v0, %v1719_v0  ;;  %1792 = vst [vmem:[%s5531_s11 + $0x18] sm:$0xff] %v1719_v0 }
 0x163   : > { %v1077_v8 = vadd.f32 %v4054_v21, %v1076_v58  ;;  %v1098_v28 = vadd.f32 %v1091_v62, %v1090_v47 }
 0x164   : > { %v1756_v19 = vadd.f32 %v4150_v13, %v1755_v6  ;;  %v1777_v20 = vadd.f32 %v1770_v25, %v1769_v1 }
 0x165   : > { %v1099_v36 = vadd.f32 %v1098_v28, %v1092_v7  ;;  %v4058_v24 = vpop.f32.mrb[4].mxu0  ;;  %v1078_v27 = vadd.f32 %v4055_v10, %v1077_v8 }
 0x166   : > { %v1778_v29 = vadd.f32 %v1777_v20, %v1771_v18  ;;  %1118 = vst [vmem:[%s5531_s11 + $0xc0] sm:$0xff] %v4058_v24  ;;  %v4154_v30 = vpop.f32.mrb[4].mxu1  ;;  %v1053_v61 = vpop.f32.mrb[5].mxu0  ;;  %v1757_v16 = vadd.f32 %v4151_v11, %v1756_v19  ;;  %v1096_v3 = vmul.f32 %v4058_v24, %v4058_v24 }
 0x167   : > { %1797 = vst [vmem:[%s5531_s11 + $0xc8] sm:$0xff] %v4154_v30  ;;  %v1079_v31 = vadd.f32 %v1078_v27, %v1053_v61  ;;  %v1094_v32 = vmul.f32 %v1053_v61, %v1053_v61  ;;  %v1100_v35 = vadd.f32 %v1099_v36, %v1093_v23  ;;  %1116 = vst [vmem:[%s5531_s11 + $0x80] sm:$0xff] %v1053_v61  ;;  %v1732_v33 = vpop.f32.mrb[5].mxu1  ;;  %v4059_v57 = vpop.f32.mrb[6].mxu0 }
 0x168   : > { %v1758_v38 = vadd.f32 %v1757_v16, %v1732_v33  ;;  %v1773_v43 = vmul.f32 %v1732_v33, %v1732_v33  ;;  %v1779_v44 = vadd.f32 %v1778_v29, %v1772_v59  ;;  %1795 = vst [vmem:[%s5531_s11 + $0x88] sm:$0xff] %v1732_v33  ;;  %1119 = vst [vmem:[%s5531_s11 + $0xd0] sm:$0xff] %v4059_v57  ;;  %v4155_v45 = vpop.f32.mrb[6].mxu1  ;;  %v1056_v34 = vpop.f32.mrb[7].mxu0 }
 0x169   : > { %v1101_v42 = vadd.f32 %v1100_v35, %v1094_v32  ;;  %1798 = vst [vmem:[%s5531_s11 + $0xd8] sm:$0xff] %v4155_v45  ;;  %v1080_v37 = vadd.f32 %v1079_v31, %v1056_v34  ;;  %v1095_v46 = vmul.f32 %v1056_v34, %v1056_v34  ;;  %1117 = vst [vmem:[%s5531_s11 + $0x90] sm:$0xff] %v1056_v34  ;;  %v1735_v53 = vpop.f32.mrb[7].mxu1 }
 0x16a   : > { %v1780_v48 = vadd.f32 %v1779_v44, %v1773_v43  ;;  %v1759_v49 = vadd.f32 %v1758_v38, %v1735_v53  ;;  %v1774_v50 = vmul.f32 %v1735_v53, %v1735_v53  ;;  %1796 = vst [vmem:[%s5531_s11 + $0x98] sm:$0xff] %v1735_v53  ;;  %v1775_v39 = vmul.f32 %v4154_v30, %v4154_v30 }
 0x16b   : > { %v1081_v40 = vadd.f32 %v4058_v24, %v1080_v37  ;;  %v1102_v4 = vadd.f32 %v1101_v42, %v1095_v46  ;;  %v1097_v60 = vmul.f32 %v4059_v57, %v4059_v57  ;;  %v1776_v5 = vmul.f32 %v4155_v45, %v4155_v45 }
 0x16c   : > { %v1760_v51 = vadd.f32 %v4154_v30, %v1759_v49  ;;  %v1781_v2 = vadd.f32 %v1780_v48, %v1774_v50 }
 0x16d   : > { %v1082_v14 = vadd.f32 %v4059_v57, %v1081_v40  ;;  %v1103_v12 = vadd.f32 %v1102_v4, %v1096_v3 }
 0x16e   : > { %v1761_v41 = vadd.f32 %v4155_v45, %v1760_v51  ;;  %v1782_v15 = vadd.f32 %v1781_v2, %v1775_v39 }
 0x16f   : > { %v1083_v9 = vrot.slane %v1082_v14, 4  ;;  %v1104_v22 = vadd.f32 %v1103_v12, %v1097_v60 }
 0x170   : > { %v1762_v54 = vrot.slane %v1761_v41, 4  ;;  %v1783_v26 = vadd.f32 %v1782_v15, %v1776_v5 }
 0x171   : > { %v1084_v55 = vadd.f32 %v1083_v9, %v1082_v14  ;;  %v1105_v63 = vrot.slane %v1104_v22, 4 }
 0x172   : > { %v1763_v21 = vadd.f32 %v1762_v54, %v1761_v41  ;;  %v1784_v13 = vrot.slane %v1783_v26, 4 }
 0x173   : > { %v1085_v52 = vrot.slane %v1084_v55, 2  ;;  %v1106_v56 = vadd.f32 %v1105_v63, %v1104_v22 }
 0x174   : > { %v1764_v10 = vrot.slane %v1763_v21, 2  ;;  %v1785_v11 = vadd.f32 %v1784_v13, %v1783_v26 }
 0x175   : > { %v1086_v17 = vadd.f32 %v1085_v52, %v1084_v55  ;;  %v1107_v47 = vrot.slane %v1106_v56, 2 }
 0x176   : > { %v1765_v58 = vadd.f32 %v1764_v10, %v1763_v21  ;;  %v1786_v62 = vrot.slane %v1785_v11, 2 }
 0x177   : > { %v1087_v0 = vrot.slane %v1086_v17, 1  ;;  %v1108_v1 = vadd.f32 %v1107_v47, %v1106_v56 }
 0x178   : > { %v1766_v6 = vrot.slane %v1765_v58, 1  ;;  %v1787_v25 = vadd.f32 %v1786_v62, %v1785_v11 }
 0x179   : > { %v1088_v7 = vadd.f32 %v1087_v0, %v1086_v17  ;;  %v1109_v8 = vrot.slane %v1108_v1, 1 }
 0x17a   : > { %v1767_v28 = vadd.f32 %v1766_v6, %v1765_v58  ;;  %v1788_v18 = vrot.slane %v1787_v25, 1 }
 0x17b   : > { %v1110_v19 = vadd.f32 %v1109_v8, %v1108_v1 }
 0x17c   : > { %v5549_v20 = vadd.f32 %v1767_v28, %v1088_v7  ;;  %v1789_v23 = vadd.f32 %v1788_v18, %v1787_v25 }
 0x17e   : > { %v5551_v36 = vadd.f32 %v1789_v23, %v1110_v19 }
 0x1dd   : > { %v4246_v24 = vpop.f32.mrb[8].mxu0 }
 0x1de   : > { %3651 = vst [vmem:[%s5531_s11 + $0x60] sm:$0xff] %v4246_v24  ;;  %v4342_v27 = vpop.f32.mrb[8].mxu1  ;;  %v2432_v59 = vpop.f32.mrb[9].mxu0  ;;  %v2487_v44 = vmul.f32 %v4246_v24, %v4246_v24 }
 0x1df   : > { %3763 = vst [vmem:[%s5531_s11 + $0x68] sm:$0xff] %v4342_v27  ;;  %3649 = vst [vmem:[%s5531_s11 + $0x20] sm:$0xff] %v2432_v59  ;;  %v3061_v29 = vpop.f32.mrb[9].mxu1  ;;  %v4247_v30 = vpop.f32.mrb[10].mxu0  ;;  %v2485_v31 = vmul.f32 %v2432_v59, %v2432_v59  ;;  %v3116_v42 = vmul.f32 %v4342_v27, %v4342_v27 }
 0x1e0   : > { %3761 = vst [vmem:[%s5531_s11 + $0x28] sm:$0xff] %v3061_v29  ;;  %3652 = vst [vmem:[%s5531_s11 + $0x70] sm:$0xff] %v4247_v30  ;;  %v4343_v61 = vpop.f32.mrb[10].mxu1  ;;  %v2435_v16 = vpop.f32.mrb[11].mxu0  ;;  %v3114_v57 = vmul.f32 %v3061_v29, %v3061_v29  ;;  %v2488_v53 = vmul.f32 %v4247_v30, %v4247_v30 }
 0x1e1   : > { %3764 = vst [vmem:[%s5531_s11 + $0x78] sm:$0xff] %v4343_v61  ;;  %v2471_v32 = vadd.f32 %v2435_v16, %v2432_v59  ;;  %v2486_v35 = vmul.f32 %v2435_v16, %v2435_v16  ;;  %3650 = vst [vmem:[%s5531_s11 + $0x30] sm:$0xff] %v2435_v16  ;;  %v3064_v33 = vpop.f32.mrb[11].mxu1  ;;  %v3117_v3 = vmul.f32 %v4343_v61, %v4343_v61 }
 0x1e2   : > { %v3100_v38 = vadd.f32 %v3064_v33, %v3061_v29  ;;  %v3115_v43 = vmul.f32 %v3064_v33, %v3064_v33  ;;  %3762 = vst [vmem:[%s5531_s11 + $0x38] sm:$0xff] %v3064_v33 }
 0x1e3   : > { %v2472_v45 = vadd.f32 %v4246_v24, %v2471_v32  ;;  %v2493_v34 = vadd.f32 %v2486_v35, %v2485_v31 }
 0x1e4   : > { %v3101_v37 = vadd.f32 %v4342_v27, %v3100_v38  ;;  %v3122_v46 = vadd.f32 %v3115_v43, %v3114_v57 }
 0x1e5   : > { %v2494_v48 = vadd.f32 %v2493_v34, %v2487_v44  ;;  %v4250_v49 = vpop.f32.mrb[12].mxu0  ;;  %v2473_v50 = vadd.f32 %v4247_v30, %v2472_v45 }
 0x1e6   : > { %v3123_v40 = vadd.f32 %v3122_v46, %v3116_v42  ;;  %3655 = vst [vmem:[%s5531_s11 + $0xe0] sm:$0xff] %v4250_v49  ;;  %v4346_v4 = vpop.f32.mrb[12].mxu1  ;;  %v2448_v39 = vpop.f32.mrb[13].mxu0  ;;  %v3102_v51 = vadd.f32 %v4343_v61, %v3101_v37  ;;  %v2491_v10 = vmul.f32 %v4250_v49, %v4250_v49 }
 0x1e7   : > { %3767 = vst [vmem:[%s5531_s11 + $0xe8] sm:$0xff] %v4346_v4  ;;  %v2474_v2 = vadd.f32 %v2473_v50, %v2448_v39  ;;  %v2489_v60 = vmul.f32 %v2448_v39, %v2448_v39  ;;  %v2495_v14 = vadd.f32 %v2494_v48, %v2488_v53  ;;  %3653 = vst [vmem:[%s5531_s11 + $0xa0] sm:$0xff] %v2448_v39  ;;  %v3077_v12 = vpop.f32.mrb[13].mxu1  ;;  %v4251_v5 = vpop.f32.mrb[14].mxu0 }
 0x1e8   : > { %v3103_v41 = vadd.f32 %v3102_v51, %v3077_v12  ;;  %v3118_v15 = vmul.f32 %v3077_v12, %v3077_v12  ;;  %v3124_v9 = vadd.f32 %v3123_v40, %v3117_v3  ;;  %3765 = vst [vmem:[%s5531_s11 + $0xa8] sm:$0xff] %v3077_v12  ;;  %3656 = vst [vmem:[%s5531_s11 + $0xf0] sm:$0xff] %v4251_v5  ;;  %v4347_v22 = vpop.f32.mrb[14].mxu1  ;;  %v2451_v54 = vpop.f32.mrb[15].mxu0 }
 0x1e9   : > { %v2496_v26 = vadd.f32 %v2495_v14, %v2489_v60  ;;  %3768 = vst [vmem:[%s5531_s11 + $0xf8] sm:$0xff] %v4347_v22  ;;  %v2475_v55 = vadd.f32 %v2474_v2, %v2451_v54  ;;  %v2490_v63 = vmul.f32 %v2451_v54, %v2451_v54  ;;  %3654 = vst [vmem:[%s5531_s11 + $0xb0] sm:$0xff] %v2451_v54  ;;  %v3080_v21 = vpop.f32.mrb[15].mxu1 }
 0x1ea   : > { %v3125_v13 = vadd.f32 %v3124_v9, %v3118_v15  ;;  %v3104_v52 = vadd.f32 %v3103_v41, %v3080_v21  ;;  %v3119_v56 = vmul.f32 %v3080_v21, %v3080_v21  ;;  %3766 = vst [vmem:[%s5531_s11 + $0xb8] sm:$0xff] %v3080_v21  ;;  %v3120_v47 = vmul.f32 %v4346_v4, %v4346_v4 }
 0x1eb   : > { %v2476_v11 = vadd.f32 %v4250_v49, %v2475_v55  ;;  %v2497_v17 = vadd.f32 %v2496_v26, %v2490_v63  ;;  %v2492_v0 = vmul.f32 %v4251_v5, %v4251_v5  ;;  %v3121_v25 = vmul.f32 %v4347_v22, %v4347_v22 }
 0x1ec   : > { %v3105_v58 = vadd.f32 %v4346_v4, %v3104_v52  ;;  %v3126_v62 = vadd.f32 %v3125_v13, %v3119_v56 }
 0x1ed   : > { %v2477_v1 = vadd.f32 %v4251_v5, %v2476_v11  ;;  %v2498_v6 = vadd.f32 %v2497_v17, %v2491_v10 }
 0x1ee   : > { %v3106_v7 = vadd.f32 %v4347_v22, %v3105_v58  ;;  %v3127_v8 = vadd.f32 %v3126_v62, %v3120_v47 }
 0x1ef   : > { %v2478_v28 = vrot.slane %v2477_v1, 4  ;;  %v2499_v18 = vadd.f32 %v2498_v6, %v2492_v0 }
 0x1f0   : > { %v3107_v19 = vrot.slane %v3106_v7, 4  ;;  %v3128_v23 = vadd.f32 %v3127_v8, %v3121_v25 }
 0x1f1   : > { %v2479_v24 = vadd.f32 %v2478_v28, %v2477_v1  ;;  %v2500_v27 = vrot.slane %v2499_v18, 4 }
 0x1f2   : > { %v3108_v59 = vadd.f32 %v3107_v19, %v3106_v7  ;;  %v3129_v29 = vrot.slane %v3128_v23, 4 }
 0x1f3   : > { %v2480_v30 = vrot.slane %v2479_v24, 2  ;;  %v2501_v61 = vadd.f32 %v2500_v27, %v2499_v18 }
 0x1f4   : > { %v3109_v16 = vrot.slane %v3108_v59, 2  ;;  %v3130_v31 = vadd.f32 %v3129_v29, %v3128_v23 }
 0x1f5   : > { %v2481_v32 = vadd.f32 %v2480_v30, %v2479_v24  ;;  %v2502_v35 = vrot.slane %v2501_v61, 2 }
 0x1f6   : > { %v3110_v33 = vadd.f32 %v3109_v16, %v3108_v59  ;;  %v3131_v57 = vrot.slane %v3130_v31, 2 }
 0x1f7   : > { %v2482_v38 = vrot.slane %v2481_v32, 1  ;;  %v2503_v43 = vadd.f32 %v2502_v35, %v2501_v61 }
 0x1f8   : > { %v3111_v44 = vrot.slane %v3110_v33, 1  ;;  %v3132_v45 = vadd.f32 %v3131_v57, %v3130_v31 }
 0x1f9   : > { %v2483_v34 = vadd.f32 %v2482_v38, %v2481_v32  ;;  %v2504_v42 = vrot.slane %v2503_v43, 1 }
 0x1fa   : > { %v3133_v37 = vrot.slane %v3132_v45, 1  ;;  %v3112_v48 = vadd.f32 %v3111_v44, %v3110_v33 }
 0x1fb   : > { %v2484_v46 = vadd.f32 %v2483_v34, %v5549_v20  ;;  %v2505_v53 = vadd.f32 %v2504_v42, %v2503_v43 }
 0x1fc   : > { %v3134_v3 = vadd.f32 %v3133_v37, %v3132_v45 }
 0x1fd   : > { %v2506_v49 = vadd.f32 %v2505_v53, %v5551_v36  ;;  %v3113_v50 = vadd.f32 %v3112_v48, %v2484_v46 }
 0x1ff   : > { %v3135_v40 = vadd.f32 %v3134_v3, %v2506_v49 }
 0x201   : > { %v3145_v4 = vsel %vm3144_vm6, %v3113_v50, %v3135_v40 }
 0x202   : > { %3146 = vst [vmem:[%s216_s22] sm:$0x3] %v3145_v4 }
 0x203 PF: > { %s14_s16 = sadd.s32 1, %s4663_s16   ;;  %s5600_s12 = smov %s4655_s14 }
 0x204   : > { %p11_p8 = scmp.ge.s32.totalorder %s14_s16, 10   ;;  %s5601_s13 = smov %s4659_s15 }
 0x205   : > { %s5602_s14 = smov %s5605_s17  ;;  %s5603_s15 = smov %s5609_s18 }
 0x206   :  { %13 = sbr.rel (!%p11_p8) target bundleno = 3 (0x3), region = 89 }

</bundles_post_ra>
